<compile_context>
chip_gen: v7x
topology: tpu7x:2x2x1
jax: 0.10.0
libtpu: 0.0.40
codegen_flags: <defaults>
</compile_context>

<pallas_src>
import jax
import jax.numpy as jnp
from jax import lax
from jax.experimental import pallas as pl
from jax.experimental.pallas import tpu as pltpu


def _round_up(n, m):
    return ((n + m - 1) // m) * m


def _disc_rnn_kernel(xp_ref, wc_ref, whh0_ref, w1_ref, b1_ref, bc_ref, y_ref):
    """Serial LSTM recurrence (2 layers) + classifier accumulation for one batch tile.

    xp_ref : [T, Bt, 4H]  layer-0 pre-activations (x @ Wih0 + b0), g-cols pre-scaled x2
    wc_ref : [T, Bt, H]   classifier weight, per time step, pre-broadcast over batch
    whh0_ref: [H, 4H]     layer-0 recurrent weight (g-cols pre-scaled x2)
    w1_ref : [2H, 4H]     fused layer-1 weight [[Wih1],[Whh1]] (g-cols pre-scaled x2)
    b1_ref : [1, 4H]      layer-1 bias (b_ih1 + b_hh1, g slice pre-scaled x2)
    bc_ref : [1, 1]       classifier bias
    y_ref  : [Bt, 1]      sigmoid(logits)
    """
    T, Bt, G = xp_ref.shape
    H = G // 4

    whh0 = whh0_ref[...]
    w1 = w1_ref[...]
    # Hoisted broadcast: done once, not re-emitted every (unrolled) step.
    b1 = jnp.broadcast_to(b1_ref[...], (Bt, G))

    def cell(pre, c_prev):
        # Single full-width sigmoid over all 4 gates (one EUP stream, no sliced
        # activations).  g columns were pre-scaled by 2, so tanh(z) = 2*s - 1.
        s = jax.nn.sigmoid(pre)
        i = s[:, 0:H]
        f = s[:, H:2 * H]
        g = 2.0 * s[:, 2 * H:3 * H] - 1.0
        o = s[:, 3 * H:4 * H]
        c_new = f * c_prev + i * g
        h_new = o * jnp.tanh(c_new)
        return h_new, c_new

    zeros = jnp.zeros((Bt, H), jnp.float32)
    h0, c0, h1, c1, acc = zeros, zeros, zeros, zeros, zeros

    # Fully unrolled time loop (T static & small): static indices, scheduler sees
    # across steps.
    for t in range(T):
        # Layer 0: input projection already hoisted; only the recurrent matmul here.
        pre0 = xp_ref[t] + jnp.dot(h0, whh0, preferred_element_type=jnp.float32)
        h0, c0 = cell(pre0, c0)

        # Layer 1: one fused matmul instead of two.
        xin1 = jnp.concatenate([h0, h1], axis=-1)               # [Bt, 2H]
        pre1 = jnp.dot(xin1, w1, preferred_element_type=jnp.float32) + b1
        h1, c1 = cell(pre1, c1)

        # Classifier contribution: keep it as a [Bt, H] FMA; reduce once after loop.
        acc = acc + h1 * wc_ref[t]

    logits = jnp.sum(acc, axis=-1, keepdims=True) + bc_ref[...]  # single XLU reduce
    y_ref[...] = jax.nn.sigmoid(logits)


def disc_rnn_forward(x, params, *, batch_tile=64):
    """x: [B, T, F] float32 (batch_first, like the PyTorch module). Returns [B, 1]."""
    B, T, F = x.shape
    H = params["whh0"].shape[0]
    G = 4 * H

    # ---- batch padding (fill sublanes) and batch tiling for the parallel grid ----
    B8 = _round_up(B, 8)
    Bt = min(batch_tile, B8)
    Bp = _round_up(B8, Bt)
    x_pad = jnp.pad(x.astype(jnp.float32), ((0, Bp - B), (0, 0), (0, 0)))

    # ---- weight prep: scale g-gate columns by 2 (tanh via 2*sigmoid(2z)-1) ----
    def scale_g(w):
        return w.at[..., 2 * H:3 * H].multiply(2.0)

    wih0_s = scale_g(params["wih0"])                                    # [F, 4H]
    whh0_s = scale_g(params["whh0"])                                    # [H, 4H]
    b0_s = scale_g(params["b_ih0"] + params["b_hh0"])[None, :]          # [1, 4H]
    w1_s = scale_g(jnp.concatenate([params["wih1"], params["whh1"]], 0))  # [2H, 4H]
    b1_s = scale_g(params["b_ih1"] + params["b_hh1"])[None, :]          # [1, 4H]

    wc = jnp.broadcast_to(params["wc"].reshape(T, H)[:, None, :], (T, Bp, H))
    bc = params["bc"].reshape(1, 1)

    # ---- hoisted layer-0 input projection: one batched matmul, off the serial path
    x_tm = jnp.transpose(x_pad, (1, 0, 2))                              # [T, Bp, F]
    x_proj = jnp.einsum("tbf,fg->tbg", x_tm, wih0_s) + b0_s[None]       # [T, Bp, 4H]

    grid = (Bp // Bt,)
    y_full = pl.pallas_call(
        _disc_rnn_kernel,
        out_shape=jax.ShapeDtypeStruct((Bp, 1), jnp.float32),
        grid=grid,
        in_specs=[
            pl.BlockSpec((T, Bt, G), lambda i: (0, i, 0)),   # x_proj (batch-blocked)
            pl.BlockSpec((T, Bt, H), lambda i: (0, i, 0)),   # wc
            pl.BlockSpec((H, G), lambda i: (0, 0)),          # whh0
            pl.BlockSpec((2 * H, G), lambda i: (0, 0)),      # fused layer-1 weight
            pl.BlockSpec((1, G), lambda i: (0, 0)),          # b1
            pl.BlockSpec((1, 1), lambda i: (0, 0)),          # bc
        ],
        out_specs=pl.BlockSpec((Bt, 1), lambda i: (i, 0)),
        compiler_params=pltpu.CompilerParams(
            dimension_semantics=("parallel",)),
    )(x_proj, wc, whh0_s, w1_s, b1_s, bc)

    return y_full[:B]


def ref_forward(x, params):
    """Pure-JAX reference mirroring torch.nn.LSTM + Linear + sigmoid semantics."""
    B, T, F = x.shape
    H = params["whh0"].shape[0]

    def lstm_layer(inp, wih, whh, b_ih, b_hh):
        def step(carry, x_t):
            h, c = carry
            gates = x_t @ wih + h @ whh + b_ih + b_hh
            i, f, g, o = jnp.split(gates, 4, axis=-1)
            i, f, o = jax.nn.sigmoid(i), jax.nn.sigmoid(f), jax.nn.sigmoid(o)
            g = jnp.tanh(g)
            c = f * c + i * g
            h = o * jnp.tanh(c)
            return (h, c), h
        init = (jnp.zeros((B, H), jnp.float32), jnp.zeros((B, H), jnp.float32))
        _, hs = lax.scan(step, init, jnp.transpose(inp, (1, 0, 2)))
        return jnp.transpose(hs, (1, 0, 2))

    h = lstm_layer(x, params["wih0"], params["whh0"], params["b_ih0"], params["b_hh0"])
    h = lstm_layer(h, params["wih1"], params["whh1"], params["b_ih1"], params["b_hh1"])
    flat = h.reshape(B, T * H)
    logits = flat @ params["wc"].reshape(1, T * H).T + params["bc"]
    return jax.nn.sigmoid(logits)


def init_params(key, feat, hidden, seq_len):
    """Deterministic params with PyTorch-style uniform(-1/sqrt(H), 1/sqrt(H)) init.
    LSTM weights stored pre-transposed ([in, 4H]); classifier weight [1, T*H]."""
    ks = jax.random.split(key, 10)
    k_lstm = 1.0 / jnp.sqrt(hidden)
    k_cls = 1.0 / jnp.sqrt(hidden * seq_len)
    u = lambda k, shape, s: jax.random.uniform(k, shape, jnp.float32, -s, s)
    return {
        "wih0": u(ks[0], (feat, 4 * hidden), k_lstm),
        "whh0": u(ks[1], (hidden, 4 * hidden), k_lstm),
        "b_ih0": u(ks[2], (4 * hidden,), k_lstm),
        "b_hh0": u(ks[3], (4 * hidden,), k_lstm),
        "wih1": u(ks[4], (hidden, 4 * hidden), k_lstm),
        "whh1": u(ks[5], (hidden, 4 * hidden), k_lstm),
        "b_ih1": u(ks[6], (4 * hidden,), k_lstm),
        "b_hh1": u(ks[7], (4 * hidden,), k_lstm),
        "wc": u(ks[8], (1, seq_len * hidden), k_cls),
        "bc": u(ks[9], (1,), k_cls),
    }


if __name__ == "__main__":
    B, T, F, H = 2, 8, 4, 32   # data_feature_shape = (B, T, F), num_units = H

    key = jax.random.PRNGKey(0)
    k_x, k_p = jax.random.split(key)
    x = jax.random.normal(k_x, (B, T, F), jnp.float32)
    params = init_params(k_p, F, H, T)

    fwd = jax.jit(disc_rnn_forward)
    y = fwd(x, params)
    jax.block_until_ready(y)

    y_ref = ref_forward(x, params)
    assert y.shape == (B, 1)
    assert jnp.allclose(y, y_ref, rtol=1e-3, atol=1e-3), (y, y_ref)

    print("KERNEL_OK")
</pallas_src>

<mosaic_0001>
module attributes {stable_mosaic.version = 11 : i64} {
  func.func @_disc_rnn_kernel(%arg0: i32, %arg1: memref<8x8x128xf32, #tpu.memory_space<vmem>>, %arg2: memref<8x8x32xf32, #tpu.memory_space<vmem>>, %arg3: memref<32x128xf32, #tpu.memory_space<vmem>>, %arg4: memref<64x128xf32, #tpu.memory_space<vmem>>, %arg5: memref<1x128xf32, #tpu.memory_space<vmem>>, %arg6: memref<1x1xf32, #tpu.memory_space<vmem>>, %arg7: memref<8x1xf32, #tpu.memory_space<vmem>>) attributes {dimension_semantics = [#tpu.dimension_semantics<parallel>], iteration_bounds = array<i64: 1>, scalar_prefetch = 0 : i64, scratch_operands = 0 : i64, tpu.core_type = #tpu.core_type<tc>, window_params = [{transform_indices = @transform_0, window_bounds = array<i64: 8, 8, 128>}, {transform_indices = @transform_1, window_bounds = array<i64: 8, 8, 32>}, {pipeline_mode = #tpu.pipeline_mode<synchronous>, transform_indices = @transform_2, window_bounds = array<i64: 32, 128>}, {pipeline_mode = #tpu.pipeline_mode<synchronous>, transform_indices = @transform_3, window_bounds = array<i64: 64, 128>}, {pipeline_mode = #tpu.pipeline_mode<synchronous>, transform_indices = @transform_4, window_bounds = array<i64: 1, 128>}, {pipeline_mode = #tpu.pipeline_mode<synchronous>, transform_indices = @transform_5, window_bounds = array<i64: 1, 1>}, {transform_indices = @transform_6, window_bounds = array<i64: 8, 1>}]} {
    %c0 = arith.constant 0 : index
    %c0_0 = arith.constant 0 : index
    %0 = vector.load %arg3[%c0, %c0_0] : memref<32x128xf32, #tpu.memory_space<vmem>>, vector<32x128xf32>
    %c0_1 = arith.constant 0 : index
    %c0_2 = arith.constant 0 : index
    %1 = vector.load %arg4[%c0_1, %c0_2] : memref<64x128xf32, #tpu.memory_space<vmem>>, vector<64x128xf32>
    %c0_3 = arith.constant 0 : index
    %c0_4 = arith.constant 0 : index
    %2 = vector.load %arg5[%c0_3, %c0_4] : memref<1x128xf32, #tpu.memory_space<vmem>>, vector<1x128xf32>
    %3 = vector.shape_cast %2 : vector<1x128xf32> to vector<1x128xf32>
    %4 = vector.broadcast %3 : vector<1x128xf32> to vector<8x128xf32>
    %cst = arith.constant 0.000000e+00 : f32
    %5 = vector.broadcast %cst : f32 to vector<8x32xf32>
    %c0_5 = arith.constant 0 : index
    %c0_6 = arith.constant 0 : index
    %c0_7 = arith.constant 0 : index
    %6 = vector.load %arg1[%c0_5, %c0_6, %c0_7] : memref<8x8x128xf32, #tpu.memory_space<vmem>>, vector<1x8x128xf32>
    %7 = vector.shape_cast %6 : vector<1x8x128xf32> to vector<8x128xf32>
    %cst_8 = arith.constant dense<0.000000e+00> : vector<8x128xf32>
    %8 = tpu.matmul %5, %0, %cst_8 {dimension_numbers = #tpu.dot_dimension_numbers<[1], [0], [0], [1], [0, 0, 1, 1], [], []>} : vector<8x32xf32>, vector<32x128xf32>, vector<8x128xf32> -> vector<8x128xf32>
    %9 = arith.addf %7, %8 : vector<8x128xf32>
    %10 = arith.negf %9 : vector<8x128xf32>
    %11 = math.exp %10 : vector<8x128xf32>
    %cst_9 = arith.constant 1.000000e+00 : f32
    %12 = vector.broadcast %cst_9 : f32 to vector<8x128xf32>
    %13 = arith.addf %12, %11 : vector<8x128xf32>
    %14 = arith.divf %12, %13 : vector<8x128xf32>
    %15 = vector.extract_strided_slice %14 {offsets = [0, 0], sizes = [8, 32], strides = [1, 1]} : vector<8x128xf32> to vector<8x32xf32>
    %16 = vector.extract_strided_slice %14 {offsets = [0, 32], sizes = [8, 32], strides = [1, 1]} : vector<8x128xf32> to vector<8x32xf32>
    %17 = vector.extract_strided_slice %14 {offsets = [0, 64], sizes = [8, 32], strides = [1, 1]} : vector<8x128xf32> to vector<8x32xf32>
    %cst_10 = arith.constant 2.000000e+00 : f32
    %18 = vector.broadcast %cst_10 : f32 to vector<8x32xf32>
    %19 = arith.mulf %18, %17 : vector<8x32xf32>
    %cst_11 = arith.constant 1.000000e+00 : f32
    %20 = vector.broadcast %cst_11 : f32 to vector<8x32xf32>
    %21 = arith.subf %19, %20 : vector<8x32xf32>
    %22 = vector.extract_strided_slice %14 {offsets = [0, 96], sizes = [8, 32], strides = [1, 1]} : vector<8x128xf32> to vector<8x32xf32>
    %23 = arith.mulf %16, %5 : vector<8x32xf32>
    %24 = arith.mulf %15, %21 : vector<8x32xf32>
    %25 = arith.addf %23, %24 : vector<8x32xf32>
    %26 = math.tanh %25 : vector<8x32xf32>
    %27 = arith.mulf %22, %26 : vector<8x32xf32>
    %28 = tpu.concatenate %27, %5 in 1 : vector<8x32xf32>, vector<8x32xf32> -> vector<8x64xf32>
    %cst_12 = arith.constant dense<0.000000e+00> : vector<8x128xf32>
    %29 = tpu.matmul %28, %1, %cst_12 {dimension_numbers = #tpu.dot_dimension_numbers<[1], [0], [0], [1], [0, 0, 1, 1], [], []>} : vector<8x64xf32>, vector<64x128xf32>, vector<8x128xf32> -> vector<8x128xf32>
    %30 = arith.addf %29, %4 : vector<8x128xf32>
    %31 = arith.negf %30 : vector<8x128xf32>
    %32 = math.exp %31 : vector<8x128xf32>
    %cst_13 = arith.constant 1.000000e+00 : f32
    %33 = vector.broadcast %cst_13 : f32 to vector<8x128xf32>
    %34 = arith.addf %33, %32 : vector<8x128xf32>
    %35 = arith.divf %33, %34 : vector<8x128xf32>
    %36 = vector.extract_strided_slice %35 {offsets = [0, 0], sizes = [8, 32], strides = [1, 1]} : vector<8x128xf32> to vector<8x32xf32>
    %37 = vector.extract_strided_slice %35 {offsets = [0, 32], sizes = [8, 32], strides = [1, 1]} : vector<8x128xf32> to vector<8x32xf32>
    %38 = vector.extract_strided_slice %35 {offsets = [0, 64], sizes = [8, 32], strides = [1, 1]} : vector<8x128xf32> to vector<8x32xf32>
    %cst_14 = arith.constant 2.000000e+00 : f32
    %39 = vector.broadcast %cst_14 : f32 to vector<8x32xf32>
    %40 = arith.mulf %39, %38 : vector<8x32xf32>
    %cst_15 = arith.constant 1.000000e+00 : f32
    %41 = vector.broadcast %cst_15 : f32 to vector<8x32xf32>
    %42 = arith.subf %40, %41 : vector<8x32xf32>
    %43 = vector.extract_strided_slice %35 {offsets = [0, 96], sizes = [8, 32], strides = [1, 1]} : vector<8x128xf32> to vector<8x32xf32>
    %44 = arith.mulf %37, %5 : vector<8x32xf32>
    %45 = arith.mulf %36, %42 : vector<8x32xf32>
    %46 = arith.addf %44, %45 : vector<8x32xf32>
    %47 = math.tanh %46 : vector<8x32xf32>
    %48 = arith.mulf %43, %47 : vector<8x32xf32>
    %c0_16 = arith.constant 0 : index
    %c0_17 = arith.constant 0 : index
    %c0_18 = arith.constant 0 : index
    %49 = vector.load %arg2[%c0_16, %c0_17, %c0_18] : memref<8x8x32xf32, #tpu.memory_space<vmem>>, vector<1x8x32xf32>
    %50 = vector.shape_cast %49 : vector<1x8x32xf32> to vector<8x32xf32>
    %51 = arith.mulf %48, %50 : vector<8x32xf32>
    %52 = arith.addf %5, %51 : vector<8x32xf32>
    %c1 = arith.constant 1 : index
    %c0_19 = arith.constant 0 : index
    %c0_20 = arith.constant 0 : index
    %53 = vector.load %arg1[%c1, %c0_19, %c0_20] : memref<8x8x128xf32, #tpu.memory_space<vmem>>, vector<1x8x128xf32>
    %54 = vector.shape_cast %53 : vector<1x8x128xf32> to vector<8x128xf32>
    %cst_21 = arith.constant dense<0.000000e+00> : vector<8x128xf32>
    %55 = tpu.matmul %27, %0, %cst_21 {dimension_numbers = #tpu.dot_dimension_numbers<[1], [0], [0], [1], [0, 0, 1, 1], [], []>} : vector<8x32xf32>, vector<32x128xf32>, vector<8x128xf32> -> vector<8x128xf32>
    %56 = arith.addf %54, %55 : vector<8x128xf32>
    %57 = arith.negf %56 : vector<8x128xf32>
    %58 = math.exp %57 : vector<8x128xf32>
    %cst_22 = arith.constant 1.000000e+00 : f32
    %59 = vector.broadcast %cst_22 : f32 to vector<8x128xf32>
    %60 = arith.addf %59, %58 : vector<8x128xf32>
    %61 = arith.divf %59, %60 : vector<8x128xf32>
    %62 = vector.extract_strided_slice %61 {offsets = [0, 0], sizes = [8, 32], strides = [1, 1]} : vector<8x128xf32> to vector<8x32xf32>
    %63 = vector.extract_strided_slice %61 {offsets = [0, 32], sizes = [8, 32], strides = [1, 1]} : vector<8x128xf32> to vector<8x32xf32>
    %64 = vector.extract_strided_slice %61 {offsets = [0, 64], sizes = [8, 32], strides = [1, 1]} : vector<8x128xf32> to vector<8x32xf32>
    %cst_23 = arith.constant 2.000000e+00 : f32
    %65 = vector.broadcast %cst_23 : f32 to vector<8x32xf32>
    %66 = arith.mulf %65, %64 : vector<8x32xf32>
    %cst_24 = arith.constant 1.000000e+00 : f32
    %67 = vector.broadcast %cst_24 : f32 to vector<8x32xf32>
    %68 = arith.subf %66, %67 : vector<8x32xf32>
    %69 = vector.extract_strided_slice %61 {offsets = [0, 96], sizes = [8, 32], strides = [1, 1]} : vector<8x128xf32> to vector<8x32xf32>
    %70 = arith.mulf %63, %25 : vector<8x32xf32>
    %71 = arith.mulf %62, %68 : vector<8x32xf32>
    %72 = arith.addf %70, %71 : vector<8x32xf32>
    %73 = math.tanh %72 : vector<8x32xf32>
    %74 = arith.mulf %69, %73 : vector<8x32xf32>
    %75 = tpu.concatenate %74, %48 in 1 : vector<8x32xf32>, vector<8x32xf32> -> vector<8x64xf32>
    %cst_25 = arith.constant dense<0.000000e+00> : vector<8x128xf32>
    %76 = tpu.matmul %75, %1, %cst_25 {dimension_numbers = #tpu.dot_dimension_numbers<[1], [0], [0], [1], [0, 0, 1, 1], [], []>} : vector<8x64xf32>, vector<64x128xf32>, vector<8x128xf32> -> vector<8x128xf32>
    %77 = arith.addf %76, %4 : vector<8x128xf32>
    %78 = arith.negf %77 : vector<8x128xf32>
    %79 = math.exp %78 : vector<8x128xf32>
    %cst_26 = arith.constant 1.000000e+00 : f32
    %80 = vector.broadcast %cst_26 : f32 to vector<8x128xf32>
    %81 = arith.addf %80, %79 : vector<8x128xf32>
    %82 = arith.divf %80, %81 : vector<8x128xf32>
    %83 = vector.extract_strided_slice %82 {offsets = [0, 0], sizes = [8, 32], strides = [1, 1]} : vector<8x128xf32> to vector<8x32xf32>
    %84 = vector.extract_strided_slice %82 {offsets = [0, 32], sizes = [8, 32], strides = [1, 1]} : vector<8x128xf32> to vector<8x32xf32>
    %85 = vector.extract_strided_slice %82 {offsets = [0, 64], sizes = [8, 32], strides = [1, 1]} : vector<8x128xf32> to vector<8x32xf32>
    %cst_27 = arith.constant 2.000000e+00 : f32
    %86 = vector.broadcast %cst_27 : f32 to vector<8x32xf32>
    %87 = arith.mulf %86, %85 : vector<8x32xf32>
    %cst_28 = arith.constant 1.000000e+00 : f32
    %88 = vector.broadcast %cst_28 : f32 to vector<8x32xf32>
    %89 = arith.subf %87, %88 : vector<8x32xf32>
    %90 = vector.extract_strided_slice %82 {offsets = [0, 96], sizes = [8, 32], strides = [1, 1]} : vector<8x128xf32> to vector<8x32xf32>
    %91 = arith.mulf %84, %46 : vector<8x32xf32>
    %92 = arith.mulf %83, %89 : vector<8x32xf32>
    %93 = arith.addf %91, %92 : vector<8x32xf32>
    %94 = math.tanh %93 : vector<8x32xf32>
    %95 = arith.mulf %90, %94 : vector<8x32xf32>
    %c1_29 = arith.constant 1 : index
    %c0_30 = arith.constant 0 : index
    %c0_31 = arith.constant 0 : index
    %96 = vector.load %arg2[%c1_29, %c0_30, %c0_31] : memref<8x8x32xf32, #tpu.memory_space<vmem>>, vector<1x8x32xf32>
    %97 = vector.shape_cast %96 : vector<1x8x32xf32> to vector<8x32xf32>
    %98 = arith.mulf %95, %97 : vector<8x32xf32>
    %99 = arith.addf %52, %98 : vector<8x32xf32>
    %c2 = arith.constant 2 : index
    %c0_32 = arith.constant 0 : index
    %c0_33 = arith.constant 0 : index
    %100 = vector.load %arg1[%c2, %c0_32, %c0_33] : memref<8x8x128xf32, #tpu.memory_space<vmem>>, vector<1x8x128xf32>
    %101 = vector.shape_cast %100 : vector<1x8x128xf32> to vector<8x128xf32>
    %cst_34 = arith.constant dense<0.000000e+00> : vector<8x128xf32>
    %102 = tpu.matmul %74, %0, %cst_34 {dimension_numbers = #tpu.dot_dimension_numbers<[1], [0], [0], [1], [0, 0, 1, 1], [], []>} : vector<8x32xf32>, vector<32x128xf32>, vector<8x128xf32> -> vector<8x128xf32>
    %103 = arith.addf %101, %102 : vector<8x128xf32>
    %104 = arith.negf %103 : vector<8x128xf32>
    %105 = math.exp %104 : vector<8x128xf32>
    %cst_35 = arith.constant 1.000000e+00 : f32
    %106 = vector.broadcast %cst_35 : f32 to vector<8x128xf32>
    %107 = arith.addf %106, %105 : vector<8x128xf32>
    %108 = arith.divf %106, %107 : vector<8x128xf32>
    %109 = vector.extract_strided_slice %108 {offsets = [0, 0], sizes = [8, 32], strides = [1, 1]} : vector<8x128xf32> to vector<8x32xf32>
    %110 = vector.extract_strided_slice %108 {offsets = [0, 32], sizes = [8, 32], strides = [1, 1]} : vector<8x128xf32> to vector<8x32xf32>
    %111 = vector.extract_strided_slice %108 {offsets = [0, 64], sizes = [8, 32], strides = [1, 1]} : vector<8x128xf32> to vector<8x32xf32>
    %cst_36 = arith.constant 2.000000e+00 : f32
    %112 = vector.broadcast %cst_36 : f32 to vector<8x32xf32>
    %113 = arith.mulf %112, %111 : vector<8x32xf32>
    %cst_37 = arith.constant 1.000000e+00 : f32
    %114 = vector.broadcast %cst_37 : f32 to vector<8x32xf32>
    %115 = arith.subf %113, %114 : vector<8x32xf32>
    %116 = vector.extract_strided_slice %108 {offsets = [0, 96], sizes = [8, 32], strides = [1, 1]} : vector<8x128xf32> to vector<8x32xf32>
    %117 = arith.mulf %110, %72 : vector<8x32xf32>
    %118 = arith.mulf %109, %115 : vector<8x32xf32>
    %119 = arith.addf %117, %118 : vector<8x32xf32>
    %120 = math.tanh %119 : vector<8x32xf32>
    %121 = arith.mulf %116, %120 : vector<8x32xf32>
    %122 = tpu.concatenate %121, %95 in 1 : vector<8x32xf32>, vector<8x32xf32> -> vector<8x64xf32>
    %cst_38 = arith.constant dense<0.000000e+00> : vector<8x128xf32>
    %123 = tpu.matmul %122, %1, %cst_38 {dimension_numbers = #tpu.dot_dimension_numbers<[1], [0], [0], [1], [0, 0, 1, 1], [], []>} : vector<8x64xf32>, vector<64x128xf32>, vector<8x128xf32> -> vector<8x128xf32>
    %124 = arith.addf %123, %4 : vector<8x128xf32>
    %125 = arith.negf %124 : vector<8x128xf32>
    %126 = math.exp %125 : vector<8x128xf32>
    %cst_39 = arith.constant 1.000000e+00 : f32
    %127 = vector.broadcast %cst_39 : f32 to vector<8x128xf32>
    %128 = arith.addf %127, %126 : vector<8x128xf32>
    %129 = arith.divf %127, %128 : vector<8x128xf32>
    %130 = vector.extract_strided_slice %129 {offsets = [0, 0], sizes = [8, 32], strides = [1, 1]} : vector<8x128xf32> to vector<8x32xf32>
    %131 = vector.extract_strided_slice %129 {offsets = [0, 32], sizes = [8, 32], strides = [1, 1]} : vector<8x128xf32> to vector<8x32xf32>
    %132 = vector.extract_strided_slice %129 {offsets = [0, 64], sizes = [8, 32], strides = [1, 1]} : vector<8x128xf32> to vector<8x32xf32>
    %cst_40 = arith.constant 2.000000e+00 : f32
    %133 = vector.broadcast %cst_40 : f32 to vector<8x32xf32>
    %134 = arith.mulf %133, %132 : vector<8x32xf32>
    %cst_41 = arith.constant 1.000000e+00 : f32
    %135 = vector.broadcast %cst_41 : f32 to vector<8x32xf32>
    %136 = arith.subf %134, %135 : vector<8x32xf32>
    %137 = vector.extract_strided_slice %129 {offsets = [0, 96], sizes = [8, 32], strides = [1, 1]} : vector<8x128xf32> to vector<8x32xf32>
    %138 = arith.mulf %131, %93 : vector<8x32xf32>
    %139 = arith.mulf %130, %136 : vector<8x32xf32>
    %140 = arith.addf %138, %139 : vector<8x32xf32>
    %141 = math.tanh %140 : vector<8x32xf32>
    %142 = arith.mulf %137, %141 : vector<8x32xf32>
    %c2_42 = arith.constant 2 : index
    %c0_43 = arith.constant 0 : index
    %c0_44 = arith.constant 0 : index
    %143 = vector.load %arg2[%c2_42, %c0_43, %c0_44] : memref<8x8x32xf32, #tpu.memory_space<vmem>>, vector<1x8x32xf32>
    %144 = vector.shape_cast %143 : vector<1x8x32xf32> to vector<8x32xf32>
    %145 = arith.mulf %142, %144 : vector<8x32xf32>
    %146 = arith.addf %99, %145 : vector<8x32xf32>
    %c3 = arith.constant 3 : index
    %c0_45 = arith.constant 0 : index
    %c0_46 = arith.constant 0 : index
    %147 = vector.load %arg1[%c3, %c0_45, %c0_46] : memref<8x8x128xf32, #tpu.memory_space<vmem>>, vector<1x8x128xf32>
    %148 = vector.shape_cast %147 : vector<1x8x128xf32> to vector<8x128xf32>
    %cst_47 = arith.constant dense<0.000000e+00> : vector<8x128xf32>
    %149 = tpu.matmul %121, %0, %cst_47 {dimension_numbers = #tpu.dot_dimension_numbers<[1], [0], [0], [1], [0, 0, 1, 1], [], []>} : vector<8x32xf32>, vector<32x128xf32>, vector<8x128xf32> -> vector<8x128xf32>
    %150 = arith.addf %148, %149 : vector<8x128xf32>
    %151 = arith.negf %150 : vector<8x128xf32>
    %152 = math.exp %151 : vector<8x128xf32>
    %cst_48 = arith.constant 1.000000e+00 : f32
    %153 = vector.broadcast %cst_48 : f32 to vector<8x128xf32>
    %154 = arith.addf %153, %152 : vector<8x128xf32>
    %155 = arith.divf %153, %154 : vector<8x128xf32>
    %156 = vector.extract_strided_slice %155 {offsets = [0, 0], sizes = [8, 32], strides = [1, 1]} : vector<8x128xf32> to vector<8x32xf32>
    %157 = vector.extract_strided_slice %155 {offsets = [0, 32], sizes = [8, 32], strides = [1, 1]} : vector<8x128xf32> to vector<8x32xf32>
    %158 = vector.extract_strided_slice %155 {offsets = [0, 64], sizes = [8, 32], strides = [1, 1]} : vector<8x128xf32> to vector<8x32xf32>
    %cst_49 = arith.constant 2.000000e+00 : f32
    %159 = vector.broadcast %cst_49 : f32 to vector<8x32xf32>
    %160 = arith.mulf %159, %158 : vector<8x32xf32>
    %cst_50 = arith.constant 1.000000e+00 : f32
    %161 = vector.broadcast %cst_50 : f32 to vector<8x32xf32>
    %162 = arith.subf %160, %161 : vector<8x32xf32>
    %163 = vector.extract_strided_slice %155 {offsets = [0, 96], sizes = [8, 32], strides = [1, 1]} : vector<8x128xf32> to vector<8x32xf32>
    %164 = arith.mulf %157, %119 : vector<8x32xf32>
    %165 = arith.mulf %156, %162 : vector<8x32xf32>
    %166 = arith.addf %164, %165 : vector<8x32xf32>
    %167 = math.tanh %166 : vector<8x32xf32>
    %168 = arith.mulf %163, %167 : vector<8x32xf32>
    %169 = tpu.concatenate %168, %142 in 1 : vector<8x32xf32>, vector<8x32xf32> -> vector<8x64xf32>
    %cst_51 = arith.constant dense<0.000000e+00> : vector<8x128xf32>
    %170 = tpu.matmul %169, %1, %cst_51 {dimension_numbers = #tpu.dot_dimension_numbers<[1], [0], [0], [1], [0, 0, 1, 1], [], []>} : vector<8x64xf32>, vector<64x128xf32>, vector<8x128xf32> -> vector<8x128xf32>
    %171 = arith.addf %170, %4 : vector<8x128xf32>
    %172 = arith.negf %171 : vector<8x128xf32>
    %173 = math.exp %172 : vector<8x128xf32>
    %cst_52 = arith.constant 1.000000e+00 : f32
    %174 = vector.broadcast %cst_52 : f32 to vector<8x128xf32>
    %175 = arith.addf %174, %173 : vector<8x128xf32>
    %176 = arith.divf %174, %175 : vector<8x128xf32>
    %177 = vector.extract_strided_slice %176 {offsets = [0, 0], sizes = [8, 32], strides = [1, 1]} : vector<8x128xf32> to vector<8x32xf32>
    %178 = vector.extract_strided_slice %176 {offsets = [0, 32], sizes = [8, 32], strides = [1, 1]} : vector<8x128xf32> to vector<8x32xf32>
    %179 = vector.extract_strided_slice %176 {offsets = [0, 64], sizes = [8, 32], strides = [1, 1]} : vector<8x128xf32> to vector<8x32xf32>
    %cst_53 = arith.constant 2.000000e+00 : f32
    %180 = vector.broadcast %cst_53 : f32 to vector<8x32xf32>
    %181 = arith.mulf %180, %179 : vector<8x32xf32>
    %cst_54 = arith.constant 1.000000e+00 : f32
    %182 = vector.broadcast %cst_54 : f32 to vector<8x32xf32>
    %183 = arith.subf %181, %182 : vector<8x32xf32>
    %184 = vector.extract_strided_slice %176 {offsets = [0, 96], sizes = [8, 32], strides = [1, 1]} : vector<8x128xf32> to vector<8x32xf32>
    %185 = arith.mulf %178, %140 : vector<8x32xf32>
    %186 = arith.mulf %177, %183 : vector<8x32xf32>
    %187 = arith.addf %185, %186 : vector<8x32xf32>
    %188 = math.tanh %187 : vector<8x32xf32>
    %189 = arith.mulf %184, %188 : vector<8x32xf32>
    %c3_55 = arith.constant 3 : index
    %c0_56 = arith.constant 0 : index
    %c0_57 = arith.constant 0 : index
    %190 = vector.load %arg2[%c3_55, %c0_56, %c0_57] : memref<8x8x32xf32, #tpu.memory_space<vmem>>, vector<1x8x32xf32>
    %191 = vector.shape_cast %190 : vector<1x8x32xf32> to vector<8x32xf32>
    %192 = arith.mulf %189, %191 : vector<8x32xf32>
    %193 = arith.addf %146, %192 : vector<8x32xf32>
    %c4 = arith.constant 4 : index
    %c0_58 = arith.constant 0 : index
    %c0_59 = arith.constant 0 : index
    %194 = vector.load %arg1[%c4, %c0_58, %c0_59] : memref<8x8x128xf32, #tpu.memory_space<vmem>>, vector<1x8x128xf32>
    %195 = vector.shape_cast %194 : vector<1x8x128xf32> to vector<8x128xf32>
    %cst_60 = arith.constant dense<0.000000e+00> : vector<8x128xf32>
    %196 = tpu.matmul %168, %0, %cst_60 {dimension_numbers = #tpu.dot_dimension_numbers<[1], [0], [0], [1], [0, 0, 1, 1], [], []>} : vector<8x32xf32>, vector<32x128xf32>, vector<8x128xf32> -> vector<8x128xf32>
    %197 = arith.addf %195, %196 : vector<8x128xf32>
    %198 = arith.negf %197 : vector<8x128xf32>
    %199 = math.exp %198 : vector<8x128xf32>
    %cst_61 = arith.constant 1.000000e+00 : f32
    %200 = vector.broadcast %cst_61 : f32 to vector<8x128xf32>
    %201 = arith.addf %200, %199 : vector<8x128xf32>
    %202 = arith.divf %200, %201 : vector<8x128xf32>
    %203 = vector.extract_strided_slice %202 {offsets = [0, 0], sizes = [8, 32], strides = [1, 1]} : vector<8x128xf32> to vector<8x32xf32>
    %204 = vector.extract_strided_slice %202 {offsets = [0, 32], sizes = [8, 32], strides = [1, 1]} : vector<8x128xf32> to vector<8x32xf32>
    %205 = vector.extract_strided_slice %202 {offsets = [0, 64], sizes = [8, 32], strides = [1, 1]} : vector<8x128xf32> to vector<8x32xf32>
    %cst_62 = arith.constant 2.000000e+00 : f32
    %206 = vector.broadcast %cst_62 : f32 to vector<8x32xf32>
    %207 = arith.mulf %206, %205 : vector<8x32xf32>
    %cst_63 = arith.constant 1.000000e+00 : f32
    %208 = vector.broadcast %cst_63 : f32 to vector<8x32xf32>
    %209 = arith.subf %207, %208 : vector<8x32xf32>
    %210 = vector.extract_strided_slice %202 {offsets = [0, 96], sizes = [8, 32], strides = [1, 1]} : vector<8x128xf32> to vector<8x32xf32>
    %211 = arith.mulf %204, %166 : vector<8x32xf32>
    %212 = arith.mulf %203, %209 : vector<8x32xf32>
    %213 = arith.addf %211, %212 : vector<8x32xf32>
    %214 = math.tanh %213 : vector<8x32xf32>
    %215 = arith.mulf %210, %214 : vector<8x32xf32>
    %216 = tpu.concatenate %215, %189 in 1 : vector<8x32xf32>, vector<8x32xf32> -> vector<8x64xf32>
    %cst_64 = arith.constant dense<0.000000e+00> : vector<8x128xf32>
    %217 = tpu.matmul %216, %1, %cst_64 {dimension_numbers = #tpu.dot_dimension_numbers<[1], [0], [0], [1], [0, 0, 1, 1], [], []>} : vector<8x64xf32>, vector<64x128xf32>, vector<8x128xf32> -> vector<8x128xf32>
    %218 = arith.addf %217, %4 : vector<8x128xf32>
    %219 = arith.negf %218 : vector<8x128xf32>
    %220 = math.exp %219 : vector<8x128xf32>
    %cst_65 = arith.constant 1.000000e+00 : f32
    %221 = vector.broadcast %cst_65 : f32 to vector<8x128xf32>
    %222 = arith.addf %221, %220 : vector<8x128xf32>
    %223 = arith.divf %221, %222 : vector<8x128xf32>
    %224 = vector.extract_strided_slice %223 {offsets = [0, 0], sizes = [8, 32], strides = [1, 1]} : vector<8x128xf32> to vector<8x32xf32>
    %225 = vector.extract_strided_slice %223 {offsets = [0, 32], sizes = [8, 32], strides = [1, 1]} : vector<8x128xf32> to vector<8x32xf32>
    %226 = vector.extract_strided_slice %223 {offsets = [0, 64], sizes = [8, 32], strides = [1, 1]} : vector<8x128xf32> to vector<8x32xf32>
    %cst_66 = arith.constant 2.000000e+00 : f32
    %227 = vector.broadcast %cst_66 : f32 to vector<8x32xf32>
    %228 = arith.mulf %227, %226 : vector<8x32xf32>
    %cst_67 = arith.constant 1.000000e+00 : f32
    %229 = vector.broadcast %cst_67 : f32 to vector<8x32xf32>
    %230 = arith.subf %228, %229 : vector<8x32xf32>
    %231 = vector.extract_strided_slice %223 {offsets = [0, 96], sizes = [8, 32], strides = [1, 1]} : vector<8x128xf32> to vector<8x32xf32>
    %232 = arith.mulf %225, %187 : vector<8x32xf32>
    %233 = arith.mulf %224, %230 : vector<8x32xf32>
    %234 = arith.addf %232, %233 : vector<8x32xf32>
    %235 = math.tanh %234 : vector<8x32xf32>
    %236 = arith.mulf %231, %235 : vector<8x32xf32>
    %c4_68 = arith.constant 4 : index
    %c0_69 = arith.constant 0 : index
    %c0_70 = arith.constant 0 : index
    %237 = vector.load %arg2[%c4_68, %c0_69, %c0_70] : memref<8x8x32xf32, #tpu.memory_space<vmem>>, vector<1x8x32xf32>
    %238 = vector.shape_cast %237 : vector<1x8x32xf32> to vector<8x32xf32>
    %239 = arith.mulf %236, %238 : vector<8x32xf32>
    %240 = arith.addf %193, %239 : vector<8x32xf32>
    %c5 = arith.constant 5 : index
    %c0_71 = arith.constant 0 : index
    %c0_72 = arith.constant 0 : index
    %241 = vector.load %arg1[%c5, %c0_71, %c0_72] : memref<8x8x128xf32, #tpu.memory_space<vmem>>, vector<1x8x128xf32>
    %242 = vector.shape_cast %241 : vector<1x8x128xf32> to vector<8x128xf32>
    %cst_73 = arith.constant dense<0.000000e+00> : vector<8x128xf32>
    %243 = tpu.matmul %215, %0, %cst_73 {dimension_numbers = #tpu.dot_dimension_numbers<[1], [0], [0], [1], [0, 0, 1, 1], [], []>} : vector<8x32xf32>, vector<32x128xf32>, vector<8x128xf32> -> vector<8x128xf32>
    %244 = arith.addf %242, %243 : vector<8x128xf32>
    %245 = arith.negf %244 : vector<8x128xf32>
    %246 = math.exp %245 : vector<8x128xf32>
    %cst_74 = arith.constant 1.000000e+00 : f32
    %247 = vector.broadcast %cst_74 : f32 to vector<8x128xf32>
    %248 = arith.addf %247, %246 : vector<8x128xf32>
    %249 = arith.divf %247, %248 : vector<8x128xf32>
    %250 = vector.extract_strided_slice %249 {offsets = [0, 0], sizes = [8, 32], strides = [1, 1]} : vector<8x128xf32> to vector<8x32xf32>
    %251 = vector.extract_strided_slice %249 {offsets = [0, 32], sizes = [8, 32], strides = [1, 1]} : vector<8x128xf32> to vector<8x32xf32>
    %252 = vector.extract_strided_slice %249 {offsets = [0, 64], sizes = [8, 32], strides = [1, 1]} : vector<8x128xf32> to vector<8x32xf32>
    %cst_75 = arith.constant 2.000000e+00 : f32
    %253 = vector.broadcast %cst_75 : f32 to vector<8x32xf32>
    %254 = arith.mulf %253, %252 : vector<8x32xf32>
    %cst_76 = arith.constant 1.000000e+00 : f32
    %255 = vector.broadcast %cst_76 : f32 to vector<8x32xf32>
    %256 = arith.subf %254, %255 : vector<8x32xf32>
    %257 = vector.extract_strided_slice %249 {offsets = [0, 96], sizes = [8, 32], strides = [1, 1]} : vector<8x128xf32> to vector<8x32xf32>
    %258 = arith.mulf %251, %213 : vector<8x32xf32>
    %259 = arith.mulf %250, %256 : vector<8x32xf32>
    %260 = arith.addf %258, %259 : vector<8x32xf32>
    %261 = math.tanh %260 : vector<8x32xf32>
    %262 = arith.mulf %257, %261 : vector<8x32xf32>
    %263 = tpu.concatenate %262, %236 in 1 : vector<8x32xf32>, vector<8x32xf32> -> vector<8x64xf32>
    %cst_77 = arith.constant dense<0.000000e+00> : vector<8x128xf32>
    %264 = tpu.matmul %263, %1, %cst_77 {dimension_numbers = #tpu.dot_dimension_numbers<[1], [0], [0], [1], [0, 0, 1, 1], [], []>} : vector<8x64xf32>, vector<64x128xf32>, vector<8x128xf32> -> vector<8x128xf32>
    %265 = arith.addf %264, %4 : vector<8x128xf32>
    %266 = arith.negf %265 : vector<8x128xf32>
    %267 = math.exp %266 : vector<8x128xf32>
    %cst_78 = arith.constant 1.000000e+00 : f32
    %268 = vector.broadcast %cst_78 : f32 to vector<8x128xf32>
    %269 = arith.addf %268, %267 : vector<8x128xf32>
    %270 = arith.divf %268, %269 : vector<8x128xf32>
    %271 = vector.extract_strided_slice %270 {offsets = [0, 0], sizes = [8, 32], strides = [1, 1]} : vector<8x128xf32> to vector<8x32xf32>
    %272 = vector.extract_strided_slice %270 {offsets = [0, 32], sizes = [8, 32], strides = [1, 1]} : vector<8x128xf32> to vector<8x32xf32>
    %273 = vector.extract_strided_slice %270 {offsets = [0, 64], sizes = [8, 32], strides = [1, 1]} : vector<8x128xf32> to vector<8x32xf32>
    %cst_79 = arith.constant 2.000000e+00 : f32
    %274 = vector.broadcast %cst_79 : f32 to vector<8x32xf32>
    %275 = arith.mulf %274, %273 : vector<8x32xf32>
    %cst_80 = arith.constant 1.000000e+00 : f32
    %276 = vector.broadcast %cst_80 : f32 to vector<8x32xf32>
    %277 = arith.subf %275, %276 : vector<8x32xf32>
    %278 = vector.extract_strided_slice %270 {offsets = [0, 96], sizes = [8, 32], strides = [1, 1]} : vector<8x128xf32> to vector<8x32xf32>
    %279 = arith.mulf %272, %234 : vector<8x32xf32>
    %280 = arith.mulf %271, %277 : vector<8x32xf32>
    %281 = arith.addf %279, %280 : vector<8x32xf32>
    %282 = math.tanh %281 : vector<8x32xf32>
    %283 = arith.mulf %278, %282 : vector<8x32xf32>
    %c5_81 = arith.constant 5 : index
    %c0_82 = arith.constant 0 : index
    %c0_83 = arith.constant 0 : index
    %284 = vector.load %arg2[%c5_81, %c0_82, %c0_83] : memref<8x8x32xf32, #tpu.memory_space<vmem>>, vector<1x8x32xf32>
    %285 = vector.shape_cast %284 : vector<1x8x32xf32> to vector<8x32xf32>
    %286 = arith.mulf %283, %285 : vector<8x32xf32>
    %287 = arith.addf %240, %286 : vector<8x32xf32>
    %c6 = arith.constant 6 : index
    %c0_84 = arith.constant 0 : index
    %c0_85 = arith.constant 0 : index
    %288 = vector.load %arg1[%c6, %c0_84, %c0_85] : memref<8x8x128xf32, #tpu.memory_space<vmem>>, vector<1x8x128xf32>
    %289 = vector.shape_cast %288 : vector<1x8x128xf32> to vector<8x128xf32>
    %cst_86 = arith.constant dense<0.000000e+00> : vector<8x128xf32>
    %290 = tpu.matmul %262, %0, %cst_86 {dimension_numbers = #tpu.dot_dimension_numbers<[1], [0], [0], [1], [0, 0, 1, 1], [], []>} : vector<8x32xf32>, vector<32x128xf32>, vector<8x128xf32> -> vector<8x128xf32>
    %291 = arith.addf %289, %290 : vector<8x128xf32>
    %292 = arith.negf %291 : vector<8x128xf32>
    %293 = math.exp %292 : vector<8x128xf32>
    %cst_87 = arith.constant 1.000000e+00 : f32
    %294 = vector.broadcast %cst_87 : f32 to vector<8x128xf32>
    %295 = arith.addf %294, %293 : vector<8x128xf32>
    %296 = arith.divf %294, %295 : vector<8x128xf32>
    %297 = vector.extract_strided_slice %296 {offsets = [0, 0], sizes = [8, 32], strides = [1, 1]} : vector<8x128xf32> to vector<8x32xf32>
    %298 = vector.extract_strided_slice %296 {offsets = [0, 32], sizes = [8, 32], strides = [1, 1]} : vector<8x128xf32> to vector<8x32xf32>
    %299 = vector.extract_strided_slice %296 {offsets = [0, 64], sizes = [8, 32], strides = [1, 1]} : vector<8x128xf32> to vector<8x32xf32>
    %cst_88 = arith.constant 2.000000e+00 : f32
    %300 = vector.broadcast %cst_88 : f32 to vector<8x32xf32>
    %301 = arith.mulf %300, %299 : vector<8x32xf32>
    %cst_89 = arith.constant 1.000000e+00 : f32
    %302 = vector.broadcast %cst_89 : f32 to vector<8x32xf32>
    %303 = arith.subf %301, %302 : vector<8x32xf32>
    %304 = vector.extract_strided_slice %296 {offsets = [0, 96], sizes = [8, 32], strides = [1, 1]} : vector<8x128xf32> to vector<8x32xf32>
    %305 = arith.mulf %298, %260 : vector<8x32xf32>
    %306 = arith.mulf %297, %303 : vector<8x32xf32>
    %307 = arith.addf %305, %306 : vector<8x32xf32>
    %308 = math.tanh %307 : vector<8x32xf32>
    %309 = arith.mulf %304, %308 : vector<8x32xf32>
    %310 = tpu.concatenate %309, %283 in 1 : vector<8x32xf32>, vector<8x32xf32> -> vector<8x64xf32>
    %cst_90 = arith.constant dense<0.000000e+00> : vector<8x128xf32>
    %311 = tpu.matmul %310, %1, %cst_90 {dimension_numbers = #tpu.dot_dimension_numbers<[1], [0], [0], [1], [0, 0, 1, 1], [], []>} : vector<8x64xf32>, vector<64x128xf32>, vector<8x128xf32> -> vector<8x128xf32>
    %312 = arith.addf %311, %4 : vector<8x128xf32>
    %313 = arith.negf %312 : vector<8x128xf32>
    %314 = math.exp %313 : vector<8x128xf32>
    %cst_91 = arith.constant 1.000000e+00 : f32
    %315 = vector.broadcast %cst_91 : f32 to vector<8x128xf32>
    %316 = arith.addf %315, %314 : vector<8x128xf32>
    %317 = arith.divf %315, %316 : vector<8x128xf32>
    %318 = vector.extract_strided_slice %317 {offsets = [0, 0], sizes = [8, 32], strides = [1, 1]} : vector<8x128xf32> to vector<8x32xf32>
    %319 = vector.extract_strided_slice %317 {offsets = [0, 32], sizes = [8, 32], strides = [1, 1]} : vector<8x128xf32> to vector<8x32xf32>
    %320 = vector.extract_strided_slice %317 {offsets = [0, 64], sizes = [8, 32], strides = [1, 1]} : vector<8x128xf32> to vector<8x32xf32>
    %cst_92 = arith.constant 2.000000e+00 : f32
    %321 = vector.broadcast %cst_92 : f32 to vector<8x32xf32>
    %322 = arith.mulf %321, %320 : vector<8x32xf32>
    %cst_93 = arith.constant 1.000000e+00 : f32
    %323 = vector.broadcast %cst_93 : f32 to vector<8x32xf32>
    %324 = arith.subf %322, %323 : vector<8x32xf32>
    %325 = vector.extract_strided_slice %317 {offsets = [0, 96], sizes = [8, 32], strides = [1, 1]} : vector<8x128xf32> to vector<8x32xf32>
    %326 = arith.mulf %319, %281 : vector<8x32xf32>
    %327 = arith.mulf %318, %324 : vector<8x32xf32>
    %328 = arith.addf %326, %327 : vector<8x32xf32>
    %329 = math.tanh %328 : vector<8x32xf32>
    %330 = arith.mulf %325, %329 : vector<8x32xf32>
    %c6_94 = arith.constant 6 : index
    %c0_95 = arith.constant 0 : index
    %c0_96 = arith.constant 0 : index
    %331 = vector.load %arg2[%c6_94, %c0_95, %c0_96] : memref<8x8x32xf32, #tpu.memory_space<vmem>>, vector<1x8x32xf32>
    %332 = vector.shape_cast %331 : vector<1x8x32xf32> to vector<8x32xf32>
    %333 = arith.mulf %330, %332 : vector<8x32xf32>
    %334 = arith.addf %287, %333 : vector<8x32xf32>
    %c7 = arith.constant 7 : index
    %c0_97 = arith.constant 0 : index
    %c0_98 = arith.constant 0 : index
    %335 = vector.load %arg1[%c7, %c0_97, %c0_98] : memref<8x8x128xf32, #tpu.memory_space<vmem>>, vector<1x8x128xf32>
    %336 = vector.shape_cast %335 : vector<1x8x128xf32> to vector<8x128xf32>
    %cst_99 = arith.constant dense<0.000000e+00> : vector<8x128xf32>
    %337 = tpu.matmul %309, %0, %cst_99 {dimension_numbers = #tpu.dot_dimension_numbers<[1], [0], [0], [1], [0, 0, 1, 1], [], []>} : vector<8x32xf32>, vector<32x128xf32>, vector<8x128xf32> -> vector<8x128xf32>
    %338 = arith.addf %336, %337 : vector<8x128xf32>
    %339 = arith.negf %338 : vector<8x128xf32>
    %340 = math.exp %339 : vector<8x128xf32>
    %cst_100 = arith.constant 1.000000e+00 : f32
    %341 = vector.broadcast %cst_100 : f32 to vector<8x128xf32>
    %342 = arith.addf %341, %340 : vector<8x128xf32>
    %343 = arith.divf %341, %342 : vector<8x128xf32>
    %344 = vector.extract_strided_slice %343 {offsets = [0, 0], sizes = [8, 32], strides = [1, 1]} : vector<8x128xf32> to vector<8x32xf32>
    %345 = vector.extract_strided_slice %343 {offsets = [0, 32], sizes = [8, 32], strides = [1, 1]} : vector<8x128xf32> to vector<8x32xf32>
    %346 = vector.extract_strided_slice %343 {offsets = [0, 64], sizes = [8, 32], strides = [1, 1]} : vector<8x128xf32> to vector<8x32xf32>
    %cst_101 = arith.constant 2.000000e+00 : f32
    %347 = vector.broadcast %cst_101 : f32 to vector<8x32xf32>
    %348 = arith.mulf %347, %346 : vector<8x32xf32>
    %cst_102 = arith.constant 1.000000e+00 : f32
    %349 = vector.broadcast %cst_102 : f32 to vector<8x32xf32>
    %350 = arith.subf %348, %349 : vector<8x32xf32>
    %351 = vector.extract_strided_slice %343 {offsets = [0, 96], sizes = [8, 32], strides = [1, 1]} : vector<8x128xf32> to vector<8x32xf32>
    %352 = arith.mulf %345, %307 : vector<8x32xf32>
    %353 = arith.mulf %344, %350 : vector<8x32xf32>
    %354 = arith.addf %352, %353 : vector<8x32xf32>
    %355 = math.tanh %354 : vector<8x32xf32>
    %356 = arith.mulf %351, %355 : vector<8x32xf32>
    %357 = tpu.concatenate %356, %330 in 1 : vector<8x32xf32>, vector<8x32xf32> -> vector<8x64xf32>
    %cst_103 = arith.constant dense<0.000000e+00> : vector<8x128xf32>
    %358 = tpu.matmul %357, %1, %cst_103 {dimension_numbers = #tpu.dot_dimension_numbers<[1], [0], [0], [1], [0, 0, 1, 1], [], []>} : vector<8x64xf32>, vector<64x128xf32>, vector<8x128xf32> -> vector<8x128xf32>
    %359 = arith.addf %358, %4 : vector<8x128xf32>
    %360 = arith.negf %359 : vector<8x128xf32>
    %361 = math.exp %360 : vector<8x128xf32>
    %cst_104 = arith.constant 1.000000e+00 : f32
    %362 = vector.broadcast %cst_104 : f32 to vector<8x128xf32>
    %363 = arith.addf %362, %361 : vector<8x128xf32>
    %364 = arith.divf %362, %363 : vector<8x128xf32>
    %365 = vector.extract_strided_slice %364 {offsets = [0, 0], sizes = [8, 32], strides = [1, 1]} : vector<8x128xf32> to vector<8x32xf32>
    %366 = vector.extract_strided_slice %364 {offsets = [0, 32], sizes = [8, 32], strides = [1, 1]} : vector<8x128xf32> to vector<8x32xf32>
    %367 = vector.extract_strided_slice %364 {offsets = [0, 64], sizes = [8, 32], strides = [1, 1]} : vector<8x128xf32> to vector<8x32xf32>
    %cst_105 = arith.constant 2.000000e+00 : f32
    %368 = vector.broadcast %cst_105 : f32 to vector<8x32xf32>
    %369 = arith.mulf %368, %367 : vector<8x32xf32>
    %cst_106 = arith.constant 1.000000e+00 : f32
    %370 = vector.broadcast %cst_106 : f32 to vector<8x32xf32>
    %371 = arith.subf %369, %370 : vector<8x32xf32>
    %372 = vector.extract_strided_slice %364 {offsets = [0, 96], sizes = [8, 32], strides = [1, 1]} : vector<8x128xf32> to vector<8x32xf32>
    %373 = arith.mulf %366, %328 : vector<8x32xf32>
    %374 = arith.mulf %365, %371 : vector<8x32xf32>
    %375 = arith.addf %373, %374 : vector<8x32xf32>
    %376 = math.tanh %375 : vector<8x32xf32>
    %377 = arith.mulf %372, %376 : vector<8x32xf32>
    %c7_107 = arith.constant 7 : index
    %c0_108 = arith.constant 0 : index
    %c0_109 = arith.constant 0 : index
    %378 = vector.load %arg2[%c7_107, %c0_108, %c0_109] : memref<8x8x32xf32, #tpu.memory_space<vmem>>, vector<1x8x32xf32>
    %379 = vector.shape_cast %378 : vector<1x8x32xf32> to vector<8x32xf32>
    %380 = arith.mulf %377, %379 : vector<8x32xf32>
    %381 = arith.addf %334, %380 : vector<8x32xf32>
    %cst_110 = arith.constant dense<0.000000e+00> : vector<8xf32>
    %382 = vector.multi_reduction <add>, %381, %cst_110 [1] : vector<8x32xf32> to vector<8xf32>
    %383 = vector.shape_cast %382 : vector<8xf32> to vector<8x1xf32>
    %c0_111 = arith.constant 0 : index
    %c0_112 = arith.constant 0 : index
    %384 = vector.load %arg6[%c0_111, %c0_112] : memref<1x1xf32, #tpu.memory_space<vmem>>, vector<1x1xf32>
    %385 = vector.broadcast %384 : vector<1x1xf32> to vector<8x1xf32>
    %386 = arith.addf %383, %385 : vector<8x1xf32>
    %387 = arith.negf %386 : vector<8x1xf32>
    %388 = math.exp %387 : vector<8x1xf32>
    %cst_113 = arith.constant 1.000000e+00 : f32
    %389 = vector.broadcast %cst_113 : f32 to vector<8x1xf32>
    %390 = arith.addf %389, %388 : vector<8x1xf32>
    %391 = arith.divf %389, %390 : vector<8x1xf32>
    %c0_114 = arith.constant 0 : index
    %c0_115 = arith.constant 0 : index
    %392 = vector.load %arg7[%c0_114, %c0_115] : memref<8x1xf32, #tpu.memory_space<vmem>>, vector<8x1xf32>
    tpu.vector_store %arg7[%c0_114, %c0_115], %391 {strides = array<i32>} : memref<8x1xf32, #tpu.memory_space<vmem>>, vector<8x1xf32>,
    return
  }
  func.func @transform_0(%arg0: i32) -> (i32, i32, i32) {
    %c0_i32 = arith.constant 0 : i32
    %c0_i32_0 = arith.constant 0 : i32
    %c0_i32_1 = arith.constant 0 : i32
    return %c0_i32, %arg0, %c0_i32_0 : i32, i32, i32
  }
  func.func @transform_1(%arg0: i32) -> (i32, i32, i32) {
    %c0_i32 = arith.constant 0 : i32
    %c0_i32_0 = arith.constant 0 : i32
    %c0_i32_1 = arith.constant 0 : i32
    return %c0_i32, %arg0, %c0_i32_0 : i32, i32, i32
  }
  func.func @transform_2(%arg0: i32) -> (i32, i32) {
    %c0_i32 = arith.constant 0 : i32
    %c0_i32_0 = arith.constant 0 : i32
    %c0_i32_1 = arith.constant 0 : i32
    return %c0_i32, %c0_i32_0 : i32, i32
  }
  func.func @transform_3(%arg0: i32) -> (i32, i32) {
    %c0_i32 = arith.constant 0 : i32
    %c0_i32_0 = arith.constant 0 : i32
    %c0_i32_1 = arith.constant 0 : i32
    return %c0_i32, %c0_i32_0 : i32, i32
  }
  func.func @transform_4(%arg0: i32) -> (i32, i32) {
    %c0_i32 = arith.constant 0 : i32
    %c0_i32_0 = arith.constant 0 : i32
    %c0_i32_1 = arith.constant 0 : i32
    return %c0_i32, %c0_i32_0 : i32, i32
  }
  func.func @transform_5(%arg0: i32) -> (i32, i32) {
    %c0_i32 = arith.constant 0 : i32
    %c0_i32_0 = arith.constant 0 : i32
    %c0_i32_1 = arith.constant 0 : i32
    return %c0_i32, %c0_i32_0 : i32, i32
  }
  func.func @transform_6(%arg0: i32) -> (i32, i32) {
    %c0_i32 = arith.constant 0 : i32
    %c0_i32_0 = arith.constant 0 : i32
    return %arg0, %c0_i32 : i32, i32
  }
}

</mosaic_0001>

<bundles_post_ra>
// kernel: disc_rnn_forward.1
= control target key start
LH: loop header
LB: loop body
LE: loop exit
PB: predicated region body
PF: predicated region fallthrough
CT: control target
= control target key end

     0   :  { %v2454_v0 = vmov 0.0|0.0   ;;  %vm2455_vm0 = vmmov 0   ;;  %v2456_v4 = vmov 0.0   ;;  %s2457_s30 = smov 64   ;;  %s2458_s7 = smov 32   ;;  %vm45_vm1 = vcmask 261120   ;;  %s2899_s2 = inlined_call_operand.vmem [shape: f32[32,128], index: 2, kind: input, shape index: {}]   ;;  %s2900_s0 = inlined_call_operand.vmem [shape: f32[8,8,128], index: 0, kind: input, shape index: {}]   ;;  %s2901_s3 = inlined_call_operand.vmem [shape: f32[64,128], index: 3, kind: input, shape index: {}]   ;;  %s2902_s4 = inlined_call_operand.vmem [shape: f32[1,128], index: 4, kind: input, shape index: {}]   ;;  %s2903_s1 = inlined_call_operand.vmem [shape: f32[8,8,32], index: 1, kind: input, shape index: {}]   ;;  %s2904_s5 = inlined_call_operand.<no memory space> [shape: f32[1,1], index: 5, kind: input, shape index: {}]   ;;  %s2905_s6 = inlined_call_operand.vmem [shape: f32[8,1], index: 6, kind: output, shape index: {}]  }
   0x1   :  { %2204 = vmatprep.subr.bf16.mxu1 %v2454_v0  ;;  %v25_v1 = vld [vmem:[%s2899_s2] sm:$0xff]  ;;  %v26_v2 = vld [vmem:[%s2899_s2 + $0x8] sm:$0xff]  ;;  %v27_v3 = vld [vmem:[%s2899_s2 + $0x10] sm:$0xff]  ;;  %1972 = vmatprep.mubr.msk.f32.mxu1 %vm2455_vm0, %v2456_v4  ;;  %vm150_vm2 = vcmask 523264   ;;  %s2459_s16 = smov 96   ;;  %vm1782_vm3 = vcmask 7168  }
   0x2   :  { %v2507_v5 = vpack.c.bf16 %v26_v2, %v25_v1  ;;  %v28_v6 = vld [vmem:[%s2899_s2 + $0x18] sm:$0xff]  ;;  %2222 = vmatprep.subr.bf16.mxu0 %v2454_v0  ;;  %2002 = vmatprep.mubr.msk.f32.mxu0 %vm2455_vm0, %v2456_v4  ;;  %v44_v8 = vld [vmem:[%s2900_s0] sm:$0xff]  ;;  %v30_v24 = vld [vmem:[%s2901_s3 + $0x8] sm:$0xff] }
   0x3   :  { %v2516_v7 = vpack.c.bf16 %v28_v6, %v27_v3  ;;  %v29_v23 = vld [vmem:[%s2901_s3] sm:$0xff]  ;;  %v31_v25 = vld [vmem:[%s2901_s3 + $0x10] sm:$0xff]  ;;  %v32_v27 = vld [vmem:[%s2901_s3 + $0x18] sm:$0xff] }
   0x4   :  { %2206 = vmatpush3.bf16.msra.mxu1 %v2507_v5  ;;  %2224 = vmatpush3.bf16.msra.mxu0 %v2507_v5  ;;  %v2545_v26 = vpack.c.bf16 %v30_v24, %v29_v23  ;;  %v2551_v28 = vpack.c.bf16 %v32_v27, %v31_v25  ;;  %v33_v29 = vld [vmem:[%s2901_s3 + $0x20] sm:$0xff]  ;;  %v34_v30 = vld [vmem:[%s2901_s3 + $0x28] sm:$0xff]  ;;  %v35_v32 = vld [vmem:[%s2901_s3 + $0x30] sm:$0xff] }
   0x5   :  { %2207 = vmatprep.subr.bf16.mxu1 %v2454_v0  ;;  %2225 = vmatprep.subr.bf16.mxu0 %v2454_v0  ;;  %v2561_v31 = vpack.c.bf16 %v34_v30, %v33_v29  ;;  %v36_v33 = vld [vmem:[%s2901_s3 + $0x38] sm:$0xff]  ;;  %v1794_v40 = vld [vmem:[%s2900_s0 + $0x8] sm:$0xff]  ;;  %v2603_v41 = vld [vmem:[%s2902_s4] ss:$0 sm:$0xff] }
   0x6   :  { %v2572_v35 = vpack.c.bf16 %v36_v33, %v35_v32 }
   0x8   :  { %2209 = vmatpush3.bf16.msra.mxu1 %v2516_v7  ;;  %2227 = vmatpush3.bf16.msra.mxu0 %v2516_v7 }
   0x9   :  { %2210 = vmatprep.subr.bf16.mxu1 %v2454_v0  ;;  %2228 = vmatprep.subr.bf16.mxu0 %v2454_v0 }
   0xb   :  { %1973 = vmatmul.mubr.f32.vlgmr.msra.gmra.mrb[0].mxu1 %v2456_v4 }
   0xc   :  { %1991 = vmatprep.mubr.msk.f32.mxu1 %vm2455_vm0, %v2456_v4  ;;  %2212 = vmatpush3.bf16.msra.mxu1 %v2545_v26 }
   0xd   :  { %2213 = vmatprep.subr.bf16.mxu1 %v2454_v0 }
  0x10   :  { %2215 = vmatpush3.bf16.msra.mxu1 %v2551_v28 }
  0x11   :  { %2216 = vmatprep.subr.bf16.mxu1 %v2454_v0 }
  0x14   :  { %2218 = vmatpush3.bf16.msra.mxu1 %v2561_v31 }
  0x15   :  { %2219 = vmatprep.subr.bf16.mxu1 %v2454_v0 }
  0x18   :  { %2221 = vmatpush3.bf16.msra.mxu1 %v2572_v35 }
  0x19   :  { %2240 = vmatprep.subr.bf16.mxu1 %v2454_v0 }
  0xde   :  { %v115_v9 = vpop.f32.mrb[0].mxu1 }
  0xdf   :  { %v119_v10 = vadd.f32 %v115_v9, %v44_v8  ;;  %v1974_v11 = vpop.f32.mrb[1].mxu1 }
  0xe1   :  { %v1789_v12 = vmul.f32 -1.442695, %v119_v10 }
  0xe3   :  { %2354 = vpow2.f32 %v1789_v12 }
  0xed   :  { %v2355_v13 = vpop.eup %2354 }
  0xee   :  { %v123_v14 = vadd.f32 1.0, %v2355_v13 }
  0xf0   :  { %2356 = vrcp.f32 %v123_v14 }
  0xfa   :  { %v2357_v15 = vpop.eup %2356 }
  0xfb   :  { %v126_v16 = vmul.f32 2.0, %v2357_v15  ;;  %v128_v20 = vmul.f32 0.0, %v2357_v15 }
  0xfd   :  { %v1790_v17 = vadd.f32 -1.0, %v126_v16 }
  0xff   :  { %130 = vrot.lane.b32.xlu0 %v1790_v17, %s2457_s30 }
 0x171   :  { %v131_v18 = vpop.permute.xlu0 %130 }
 0x172   :  { %v133_v19 = vmul.f32 %v2357_v15, %v131_v18 }
 0x174   :  { %135 = vrot.lane.b32.xlu0 %v133_v19, %s2458_s7  ;;  %v1802_v19 = vld [vmem:[%s2900_s0 + $0x10] sm:$0xff] }
 0x1e6   :  { %v136_v21 = vpop.permute.xlu0 %135 }
 0x1e7   :  { %v2533_v22 = vadd.f32 %v136_v21, %v128_v20 }
 0x1e9   :  { %2358 = vtanh.f32 %v2533_v22 }
 0x1f3   :  { %v2359_v34 = vpop.eup %2358 }
 0x1f4   :  { %141 = vrot.lane.b32.xlu1 %v2359_v34, %s2457_s30 }
 0x266   :  { %v142_v36 = vpop.permute.xlu1 %141 }
 0x267   :  { %v144_v37 = vmul.f32 %v2357_v15, %v142_v36 }
 0x269   :  { %146 = vrot.lane.b32.xlu1 %v144_v37, %s2458_s7 }
 0x2db   :  { %v147_v38 = vpop.permute.xlu1 %146 }
 0x2dc   :  { %v149_v39 = vsel %vm45_vm1, %v147_v38, 0.0  ;;  %2003 = vmatmul.mubr.msk.f32.vlgmr.msra.gmra.mrb[0].mxu0 %vm45_vm1, %v147_v38 }
 0x2dd   :  { %1992 = vmatmul.mubr.msk.f32.vlgmr.msra.gmra.mrb[2].mxu1 %vm150_vm2, %v149_v39  ;;  %2230 = vmatpush3.bf16.msra.mxu0 %v2545_v26 }
 0x2de   :  { %2231 = vmatprep.subr.bf16.mxu0 %v2454_v0  ;;  %2242 = vmatpush3.bf16.msra.mxu1 %v2507_v5 }
 0x2df   :  { %2243 = vmatprep.subr.bf16.mxu1 %v2454_v0  ;;  %2032 = vmatprep.mubr.msk.f32.mxu1 %vm2455_vm0, %v2456_v4 }
 0x2e0   :  { %2021 = vmatprep.mubr.msk.f32.mxu0 %vm2455_vm0, %v2456_v4 }
 0x2e1   :  { %2233 = vmatpush3.bf16.msra.mxu0 %v2551_v28 }
 0x2e2   :  { %2234 = vmatprep.subr.bf16.mxu0 %v2454_v0  ;;  %2245 = vmatpush3.bf16.msra.mxu1 %v2516_v7 }
 0x2e3   :  { %2246 = vmatprep.subr.bf16.mxu1 %v2454_v0 }
 0x2e5   :  { %2236 = vmatpush3.bf16.msra.mxu0 %v2561_v31 }
 0x2e6   :  { %2237 = vmatprep.subr.bf16.mxu0 %v2454_v0 }
 0x2e9   :  { %2239 = vmatpush3.bf16.msra.mxu0 %v2572_v35 }
 0x2ea   :  { %2258 = vmatprep.subr.bf16.mxu0 %v2454_v0 }
 0x3af   :  { %v326_v42 = vpop.f32.mrb[0].mxu0 }
 0x3b0   :  { %v330_v43 = vadd.f32 %v1794_v40, %v326_v42  ;;  %v220_v44 = vpop.f32.mrb[2].mxu1  ;;  %v2004_v45 = vpop.f32.mrb[1].mxu0 }
 0x3b1   :  { %v221_v46 = vadd.f32 %v2603_v41, %v220_v44  ;;  %v1993_v47 = vpop.f32.mrb[3].mxu1 }
 0x3b2   :  { %v1796_v48 = vmul.f32 -1.442695, %v330_v43 }
 0x3b3   :  { %v1792_v49 = vmul.f32 -1.442695, %v221_v46 }
 0x3b4   :  { %2360 = vpow2.f32 %v1796_v48 }
 0x3b5   :  { %2362 = vpow2.f32 %v1792_v49 }
 0x3be   :  { %v2361_v50 = vpop.eup %2360 }
 0x3bf   :  { %v2363_v51 = vpop.eup %2362  ;;  %v334_v52 = vadd.f32 1.0, %v2361_v50 }
 0x3c0   :  { %v227_v53 = vadd.f32 1.0, %v2363_v51 }
 0x3c1   :  { %2364 = vrcp.f32 %v334_v52 }
 0x3c2   :  { %2366 = vrcp.f32 %v227_v53 }
 0x3cb   :  { %v2365_v54 = vpop.eup %2364 }
 0x3cc   :  { %v2367_v55 = vpop.eup %2366  ;;  %v337_v56 = vmul.f32 2.0, %v2365_v54  ;;  %v339_v1 = vmul.f32 %v2365_v54, %v2533_v22 }
 0x3cd   :  { %v230_v57 = vmul.f32 2.0, %v2367_v55  ;;  %v232_v3 = vmul.f32 0.0, %v2367_v55 }
 0x3ce   :  { %v1797_v58 = vadd.f32 -1.0, %v337_v56 }
 0x3cf   :  { %v1793_v59 = vadd.f32 -1.0, %v230_v57 }
 0x3d0   :  { %341 = vrot.lane.b32.xlu1 %v1797_v58, %s2457_s30 }
 0x3d1   :  { %234 = vrot.lane.b32.xlu0 %v1793_v59, %s2457_s30 }
 0x442   :  { %v342_v60 = vpop.permute.xlu1 %341 }
 0x443   :  { %v344_v61 = vmul.f32 %v2365_v54, %v342_v60  ;;  %v235_v62 = vpop.permute.xlu0 %234 }
 0x444   :  { %v237_v63 = vmul.f32 %v2367_v55, %v235_v62  ;;  %v1810_v62 = vld [vmem:[%s2900_s0 + $0x18] sm:$0xff] }
 0x445   :  { %346 = vrot.lane.b32.xlu1 %v344_v61, %s2458_s7 }
 0x446   :  { %239 = vrot.lane.b32.xlu0 %v237_v63, %s2458_s7 }
 0x4b7   :  { %v347_v2 = vpop.permute.xlu1 %346 }
 0x4b8   :  { %v2611_v6 = vadd.f32 %v347_v2, %v339_v1  ;;  %v240_v8 = vpop.permute.xlu0 %239 }
 0x4b9   :  { %v2613_v9 = vadd.f32 %v240_v8, %v232_v3 }
 0x4ba   :  { %2368 = vtanh.f32 %v2611_v6 }
 0x4bb   :  { %2370 = vtanh.f32 %v2613_v9 }
 0x4c4   :  { %v2369_v10 = vpop.eup %2368 }
 0x4c5   :  { %v2371_v11 = vpop.eup %2370  ;;  %352 = vrot.lane.b32.xlu1 %v2369_v10, %s2457_s30 }
 0x4c6   :  { %245 = vrot.lane.b32.xlu0 %v2371_v11, %s2457_s30 }
 0x537   :  { %v353_v12 = vpop.permute.xlu1 %352 }
 0x538   :  { %v355_v13 = vmul.f32 %v2365_v54, %v353_v12  ;;  %v246_v14 = vpop.permute.xlu0 %245 }
 0x539   :  { %v2619_v15 = vmul.f32 %v2367_v55, %v246_v14 }
 0x53a   :  { %357 = vrot.lane.b32.xlu0 %v355_v13, %s2458_s7 }
 0x53b   :  { %361 = vrot.lane.b32.xlu1 %v2619_v15, %s2457_s30 }
 0x5ac   :  { %v358_v16 = vpop.permute.xlu0 %357 }
 0x5ad   :  { %v362_v17 = vpop.permute.xlu1 %361  ;;  %2033 = vmatmul.mubr.msk.f32.vlgmr.msra.gmra.mrb[4].mxu1 %vm45_vm1, %v358_v16 }
 0x5ae   :  { %v364_v18 = vsel %vm45_vm1, %v358_v16, %v362_v17  ;;  %2248 = vmatpush3.bf16.msra.mxu1 %v2545_v26  ;;  %2051 = vmatprep.mubr.msk.f32.mxu1 %vm2455_vm0, %v2456_v4 }
 0x5af   :  { %2022 = vmatmul.mubr.msk.f32.vlgmr.msra.gmra.mrb[2].mxu0 %vm150_vm2, %v364_v18  ;;  %2249 = vmatprep.subr.bf16.mxu1 %v2454_v0 }
 0x5b0   :  { %2260 = vmatpush3.bf16.msra.mxu0 %v2507_v5  ;;  %2062 = vmatprep.mubr.msk.f32.mxu0 %vm2455_vm0, %v2456_v4 }
 0x5b1   :  { %2261 = vmatprep.subr.bf16.mxu0 %v2454_v0 }
 0x5b2   :  { %2251 = vmatpush3.bf16.msra.mxu1 %v2551_v28 }
 0x5b3   :  { %2252 = vmatprep.subr.bf16.mxu1 %v2454_v0 }
 0x5b4   :  { %2263 = vmatpush3.bf16.msra.mxu0 %v2516_v7 }
 0x5b5   :  { %2264 = vmatprep.subr.bf16.mxu0 %v2454_v0 }
 0x5b6   :  { %2254 = vmatpush3.bf16.msra.mxu1 %v2561_v31 }
 0x5b7   :  { %2255 = vmatprep.subr.bf16.mxu1 %v2454_v0 }
 0x5ba   :  { %2257 = vmatpush3.bf16.msra.mxu1 %v2572_v35 }
 0x5bb   :  { %2276 = vmatprep.subr.bf16.mxu1 %v2454_v0 }
 0x680   :  { %v541_v20 = vpop.f32.mrb[4].mxu1 }
 0x681   :  { %v545_v21 = vadd.f32 %v1802_v19, %v541_v20  ;;  %v2034_v22 = vpop.f32.mrb[5].mxu1 }
 0x682   :  { %v434_v23 = vpop.f32.mrb[2].mxu0 }
 0x683   :  { %v1804_v24 = vmul.f32 -1.442695, %v545_v21  ;;  %v435_v25 = vadd.f32 %v2603_v41, %v434_v23  ;;  %v2023_v27 = vpop.f32.mrb[3].mxu0 }
 0x685   :  { %2372 = vpow2.f32 %v1804_v24  ;;  %v1799_v29 = vmul.f32 -1.442695, %v435_v25 }
 0x687   :  { %2374 = vpow2.f32 %v1799_v29 }
 0x68f   :  { %v2373_v30 = vpop.eup %2372 }
 0x690   :  { %v549_v32 = vadd.f32 1.0, %v2373_v30 }
 0x691   :  { %v2375_v33 = vpop.eup %2374 }
 0x692   :  { %2376 = vrcp.f32 %v549_v32  ;;  %v441_v34 = vadd.f32 1.0, %v2375_v33 }
 0x694   :  { %2378 = vrcp.f32 %v441_v34 }
 0x69c   :  { %v2377_v36 = vpop.eup %2376 }
 0x69d   :  { %v552_v37 = vmul.f32 2.0, %v2377_v36  ;;  %v554_v47 = vmul.f32 %v2377_v36, %v2611_v6 }
 0x69e   :  { %v2379_v38 = vpop.eup %2378 }
 0x69f   :  { %v1805_v39 = vadd.f32 -1.0, %v552_v37  ;;  %v444_v40 = vmul.f32 2.0, %v2379_v38  ;;  %v446_v50 = vmul.f32 %v2379_v38, %v2613_v9 }
 0x6a1   :  { %556 = vrot.lane.b32.xlu1 %v1805_v39, %s2457_s30  ;;  %v1800_v42 = vadd.f32 -1.0, %v444_v40 }
 0x6a3   :  { %448 = vrot.lane.b32.xlu0 %v1800_v42, %s2457_s30 }
 0x713   :  { %v557_v43 = vpop.permute.xlu1 %556 }
 0x714   :  { %v559_v44 = vmul.f32 %v2377_v36, %v557_v43 }
 0x715   :  { %v449_v45 = vpop.permute.xlu0 %448 }
 0x716   :  { %v451_v46 = vmul.f32 %v2379_v38, %v449_v45  ;;  %561 = vrot.lane.b32.xlu1 %v559_v44, %s2458_s7 }
 0x718   :  { %453 = vrot.lane.b32.xlu0 %v451_v46, %s2458_s7  ;;  %v1818_v46 = vld [vmem:[%s2900_s0 + $0x20] sm:$0xff] }
 0x788   :  { %v562_v48 = vpop.permute.xlu1 %561 }
 0x789   :  { %v2652_v49 = vadd.f32 %v562_v48, %v554_v47 }
 0x78a   :  { %v454_v51 = vpop.permute.xlu0 %453 }
 0x78b   :  { %2380 = vtanh.f32 %v2652_v49  ;;  %v2656_v52 = vadd.f32 %v454_v51, %v446_v50 }
 0x78d   :  { %2382 = vtanh.f32 %v2656_v52 }
 0x795   :  { %v2381_v53 = vpop.eup %2380 }
 0x796   :  { %567 = vrot.lane.b32.xlu1 %v2381_v53, %s2457_s30 }
 0x797   :  { %v2383_v54 = vpop.eup %2382 }
 0x798   :  { %459 = vrot.lane.b32.xlu0 %v2383_v54, %s2457_s30 }
 0x808   :  { %v568_v55 = vpop.permute.xlu1 %567 }
 0x809   :  { %v570_v56 = vmul.f32 %v2377_v36, %v568_v55 }
 0x80a   :  { %v460_v57 = vpop.permute.xlu0 %459 }
 0x80b   :  { %v2661_v58 = vmul.f32 %v2379_v38, %v460_v57  ;;  %572 = vrot.lane.b32.xlu0 %v570_v56, %s2458_s7 }
 0x80d   :  { %576 = vrot.lane.b32.xlu1 %v2661_v58, %s2457_s30 }
 0x87d   :  { %v573_v59 = vpop.permute.xlu0 %572 }
 0x87e   :  { %2063 = vmatmul.mubr.msk.f32.vlgmr.msra.gmra.mrb[4].mxu0 %vm45_vm1, %v573_v59 }
 0x87f   :  { %v577_v60 = vpop.permute.xlu1 %576  ;;  %2266 = vmatpush3.bf16.msra.mxu0 %v2545_v26  ;;  %2081 = vmatprep.mubr.msk.f32.mxu0 %vm2455_vm0, %v2456_v4 }
 0x880   :  { %v579_v61 = vsel %vm45_vm1, %v573_v59, %v577_v60  ;;  %2267 = vmatprep.subr.bf16.mxu0 %v2454_v0 }
 0x881   :  { %2052 = vmatmul.mubr.msk.f32.vlgmr.msra.gmra.mrb[6].mxu1 %vm150_vm2, %v579_v61 }
 0x882   :  { %2278 = vmatpush3.bf16.msra.mxu1 %v2507_v5  ;;  %2092 = vmatprep.mubr.msk.f32.mxu1 %vm2455_vm0, %v2456_v4 }
 0x883   :  { %2269 = vmatpush3.bf16.msra.mxu0 %v2551_v28  ;;  %2279 = vmatprep.subr.bf16.mxu1 %v2454_v0 }
 0x884   :  { %2270 = vmatprep.subr.bf16.mxu0 %v2454_v0 }
 0x886   :  { %2281 = vmatpush3.bf16.msra.mxu1 %v2516_v7 }
 0x887   :  { %2272 = vmatpush3.bf16.msra.mxu0 %v2561_v31  ;;  %2282 = vmatprep.subr.bf16.mxu1 %v2454_v0 }
 0x888   :  { %2273 = vmatprep.subr.bf16.mxu0 %v2454_v0 }
 0x88b   :  { %2275 = vmatpush3.bf16.msra.mxu0 %v2572_v35 }
 0x88c   :  { %2294 = vmatprep.subr.bf16.mxu0 %v2454_v0 }
 0x951   :  { %v756_v63 = vpop.f32.mrb[4].mxu0 }
 0x952   :  { %v760_v1 = vadd.f32 %v1810_v62, %v756_v63  ;;  %v2064_v2 = vpop.f32.mrb[5].mxu0 }
 0x954   :  { %v1812_v3 = vmul.f32 -1.442695, %v760_v1  ;;  %v649_v6 = vpop.f32.mrb[6].mxu1 }
 0x955   :  { %v650_v8 = vadd.f32 %v2603_v41, %v649_v6  ;;  %v2053_v9 = vpop.f32.mrb[7].mxu1 }
 0x956   :  { %2384 = vpow2.f32 %v1812_v3 }
 0x957   :  { %v1807_v10 = vmul.f32 -1.442695, %v650_v8 }
 0x959   :  { %2386 = vpow2.f32 %v1807_v10 }
 0x960   :  { %v2385_v11 = vpop.eup %2384 }
 0x961   :  { %v764_v12 = vadd.f32 1.0, %v2385_v11 }
 0x963   :  { %v2387_v13 = vpop.eup %2386  ;;  %2388 = vrcp.f32 %v764_v12 }
 0x964   :  { %v656_v14 = vadd.f32 1.0, %v2387_v13 }
 0x966   :  { %2390 = vrcp.f32 %v656_v14 }
 0x96d   :  { %v2389_v16 = vpop.eup %2388 }
 0x96e   :  { %v767_v17 = vmul.f32 2.0, %v2389_v16  ;;  %v769_v27 = vmul.f32 %v2389_v16, %v2652_v49 }
 0x970   :  { %v2391_v18 = vpop.eup %2390  ;;  %v1813_v19 = vadd.f32 -1.0, %v767_v17 }
 0x971   :  { %v659_v20 = vmul.f32 2.0, %v2391_v18  ;;  %v661_v32 = vmul.f32 %v2391_v18, %v2656_v52 }
 0x972   :  { %771 = vrot.lane.b32.xlu1 %v1813_v19, %s2457_s30 }
 0x973   :  { %v1808_v21 = vadd.f32 -1.0, %v659_v20 }
 0x975   :  { %663 = vrot.lane.b32.xlu0 %v1808_v21, %s2457_s30 }
 0x9e4   :  { %v772_v22 = vpop.permute.xlu1 %771 }
 0x9e5   :  { %v774_v23 = vmul.f32 %v2389_v16, %v772_v22 }
 0x9e7   :  { %776 = vrot.lane.b32.xlu1 %v774_v23, %s2458_s7  ;;  %v664_v24 = vpop.permute.xlu0 %663 }
 0x9e8   :  { %v666_v25 = vmul.f32 %v2391_v18, %v664_v24 }
 0x9ea   :  { %668 = vrot.lane.b32.xlu0 %v666_v25, %s2458_s7 }
 0xa59   :  { %v777_v29 = vpop.permute.xlu1 %776 }
 0xa5a   :  { %v2694_v30 = vadd.f32 %v777_v29, %v769_v27  ;;  %v1826_v27 = vld [vmem:[%s2900_s0 + $0x28] sm:$0xff] }
 0xa5c   :  { %2392 = vtanh.f32 %v2694_v30  ;;  %v669_v33 = vpop.permute.xlu0 %668 }
 0xa5d   :  { %v2698_v34 = vadd.f32 %v669_v33, %v661_v32 }
 0xa5f   :  { %2394 = vtanh.f32 %v2698_v34 }
 0xa66   :  { %v2393_v36 = vpop.eup %2392 }
 0xa67   :  { %782 = vrot.lane.b32.xlu1 %v2393_v36, %s2457_s30 }
 0xa69   :  { %v2395_v37 = vpop.eup %2394 }
 0xa6a   :  { %674 = vrot.lane.b32.xlu0 %v2395_v37, %s2457_s30 }
 0xad9   :  { %v783_v38 = vpop.permute.xlu1 %782 }
 0xada   :  { %v785_v39 = vmul.f32 %v2389_v16, %v783_v38 }
 0xadc   :  { %787 = vrot.lane.b32.xlu0 %v785_v39, %s2458_s7  ;;  %v675_v40 = vpop.permute.xlu0 %674 }
 0xadd   :  { %v2704_v42 = vmul.f32 %v2391_v18, %v675_v40 }
 0xadf   :  { %791 = vrot.lane.b32.xlu1 %v2704_v42, %s2457_s30 }
 0xb4e   :  { %v788_v43 = vpop.permute.xlu0 %787 }
 0xb4f   :  { %2093 = vmatmul.mubr.msk.f32.vlgmr.msra.gmra.mrb[8].mxu1 %vm45_vm1, %v788_v43 }
 0xb50   :  { %2284 = vmatpush3.bf16.msra.mxu1 %v2545_v26  ;;  %2111 = vmatprep.mubr.msk.f32.mxu1 %vm2455_vm0, %v2456_v4 }
 0xb51   :  { %v792_v44 = vpop.permute.xlu1 %791  ;;  %2285 = vmatprep.subr.bf16.mxu1 %v2454_v0 }
 0xb52   :  { %v794_v45 = vsel %vm45_vm1, %v788_v43, %v792_v44 }
 0xb53   :  { %2082 = vmatmul.mubr.msk.f32.vlgmr.msra.gmra.mrb[6].mxu0 %vm150_vm2, %v794_v45 }
 0xb54   :  { %2296 = vmatpush3.bf16.msra.mxu0 %v2507_v5  ;;  %2287 = vmatpush3.bf16.msra.mxu1 %v2551_v28 }
 0xb55   :  { %2297 = vmatprep.subr.bf16.mxu0 %v2454_v0  ;;  %2288 = vmatprep.subr.bf16.mxu1 %v2454_v0 }
 0xb56   :  { %2122 = vmatprep.mubr.msk.f32.mxu0 %vm2455_vm0, %v2456_v4 }
 0xb58   :  { %2299 = vmatpush3.bf16.msra.mxu0 %v2516_v7  ;;  %2290 = vmatpush3.bf16.msra.mxu1 %v2561_v31 }
 0xb59   :  { %2291 = vmatprep.subr.bf16.mxu1 %v2454_v0  ;;  %2300 = vmatprep.subr.bf16.mxu0 %v2454_v0 }
 0xb5c   :  { %2293 = vmatpush3.bf16.msra.mxu1 %v2572_v35 }
 0xb5d   :  { %2312 = vmatprep.subr.bf16.mxu1 %v2454_v0 }
 0xc22   :  { %v971_v47 = vpop.f32.mrb[8].mxu1 }
 0xc23   :  { %v975_v48 = vadd.f32 %v1818_v46, %v971_v47  ;;  %v2094_v49 = vpop.f32.mrb[9].mxu1 }
 0xc25   :  { %v1820_v50 = vmul.f32 -1.442695, %v975_v48 }
 0xc26   :  { %v864_v51 = vpop.f32.mrb[6].mxu0 }
 0xc27   :  { %2396 = vpow2.f32 %v1820_v50  ;;  %v865_v52 = vadd.f32 %v2603_v41, %v864_v51  ;;  %v2083_v53 = vpop.f32.mrb[7].mxu0 }
 0xc29   :  { %v1815_v54 = vmul.f32 -1.442695, %v865_v52 }
 0xc2b   :  { %2398 = vpow2.f32 %v1815_v54 }
 0xc31   :  { %v2397_v55 = vpop.eup %2396 }
 0xc32   :  { %v979_v56 = vadd.f32 1.0, %v2397_v55 }
 0xc34   :  { %2400 = vrcp.f32 %v979_v56 }
 0xc35   :  { %v2399_v57 = vpop.eup %2398 }
 0xc36   :  { %v871_v59 = vadd.f32 1.0, %v2399_v57 }
 0xc38   :  { %2402 = vrcp.f32 %v871_v59 }
 0xc3e   :  { %v2401_v60 = vpop.eup %2400 }
 0xc3f   :  { %v982_v61 = vmul.f32 2.0, %v2401_v60  ;;  %v984_v10 = vmul.f32 %v2401_v60, %v2694_v30 }
 0xc41   :  { %v1821_v62 = vadd.f32 -1.0, %v982_v61 }
 0xc42   :  { %v2403_v63 = vpop.eup %2402 }
 0xc43   :  { %986 = vrot.lane.b32.xlu1 %v1821_v62, %s2457_s30  ;;  %v874_v1 = vmul.f32 2.0, %v2403_v63  ;;  %v876_v13 = vmul.f32 %v2403_v63, %v2698_v34 }
 0xc45   :  { %v1816_v2 = vadd.f32 -1.0, %v874_v1 }
 0xc47   :  { %878 = vrot.lane.b32.xlu0 %v1816_v2, %s2457_s30 }
 0xcb5   :  { %v987_v3 = vpop.permute.xlu1 %986 }
 0xcb6   :  { %v989_v6 = vmul.f32 %v2401_v60, %v987_v3 }
 0xcb8   :  { %991 = vrot.lane.b32.xlu1 %v989_v6, %s2458_s7 }
 0xcb9   :  { %v879_v8 = vpop.permute.xlu0 %878 }
 0xcba   :  { %v881_v9 = vmul.f32 %v2403_v63, %v879_v8 }
 0xcbc   :  { %883 = vrot.lane.b32.xlu0 %v881_v9, %s2458_s7 }
 0xd2a   :  { %v992_v11 = vpop.permute.xlu1 %991 }
 0xd2b   :  { %v2736_v12 = vadd.f32 %v992_v11, %v984_v10  ;;  %v1834_v11 = vld [vmem:[%s2900_s0 + $0x30] sm:$0xff] }
 0xd2d   :  { %2404 = vtanh.f32 %v2736_v12 }
 0xd2e   :  { %v884_v14 = vpop.permute.xlu0 %883 }
 0xd2f   :  { %v2740_v16 = vadd.f32 %v884_v14, %v876_v13 }
 0xd31   :  { %2406 = vtanh.f32 %v2740_v16 }
 0xd37   :  { %v2405_v17 = vpop.eup %2404 }
 0xd38   :  { %997 = vrot.lane.b32.xlu1 %v2405_v17, %s2457_s30 }
 0xd3b   :  { %v2407_v18 = vpop.eup %2406 }
 0xd3c   :  { %889 = vrot.lane.b32.xlu0 %v2407_v18, %s2457_s30 }
 0xdaa   :  { %v998_v19 = vpop.permute.xlu1 %997 }
 0xdab   :  { %v1000_v20 = vmul.f32 %v2401_v60, %v998_v19 }
 0xdad   :  { %1002 = vrot.lane.b32.xlu0 %v1000_v20, %s2458_s7 }
 0xdae   :  { %v890_v21 = vpop.permute.xlu0 %889 }
 0xdaf   :  { %v2746_v22 = vmul.f32 %v2403_v63, %v890_v21 }
 0xdb1   :  { %1006 = vrot.lane.b32.xlu1 %v2746_v22, %s2457_s30 }
 0xe1f   :  { %v1003_v23 = vpop.permute.xlu0 %1002 }
 0xe20   :  { %2123 = vmatmul.mubr.msk.f32.vlgmr.msra.gmra.mrb[8].mxu0 %vm45_vm1, %v1003_v23 }
 0xe21   :  { %2302 = vmatpush3.bf16.msra.mxu0 %v2545_v26  ;;  %2141 = vmatprep.mubr.msk.f32.mxu0 %vm2455_vm0, %v2456_v4 }
 0xe22   :  { %2303 = vmatprep.subr.bf16.mxu0 %v2454_v0 }
 0xe23   :  { %v1007_v24 = vpop.permute.xlu1 %1006 }
 0xe24   :  { %v1009_v25 = vsel %vm45_vm1, %v1003_v23, %v1007_v24 }
 0xe25   :  { %2112 = vmatmul.mubr.msk.f32.vlgmr.msra.gmra.mrb[10].mxu1 %vm150_vm2, %v1009_v25  ;;  %2305 = vmatpush3.bf16.msra.mxu0 %v2551_v28 }
 0xe26   :  { %2314 = vmatpush3.bf16.msra.mxu1 %v2507_v5  ;;  %2306 = vmatprep.subr.bf16.mxu0 %v2454_v0 }
 0xe27   :  { %2315 = vmatprep.subr.bf16.mxu1 %v2454_v0  ;;  %2152 = vmatprep.mubr.msk.f32.mxu1 %vm2455_vm0, %v2456_v4 }
 0xe29   :  { %2308 = vmatpush3.bf16.msra.mxu0 %v2561_v31 }
 0xe2a   :  { %2317 = vmatpush3.bf16.msra.mxu1 %v2516_v7  ;;  %2309 = vmatprep.subr.bf16.mxu0 %v2454_v0 }
 0xe2b   :  { %2318 = vmatprep.subr.bf16.mxu1 %v2454_v0 }
 0xe2d   :  { %2311 = vmatpush3.bf16.msra.mxu0 %v2572_v35 }
 0xe2e   :  { %2330 = vmatprep.subr.bf16.mxu0 %v2454_v0 }
 0xef3   :  { %v1186_v29 = vpop.f32.mrb[8].mxu0 }
 0xef4   :  { %v1190_v30 = vadd.f32 %v1826_v27, %v1186_v29  ;;  %v2124_v32 = vpop.f32.mrb[9].mxu0 }
 0xef6   :  { %v1828_v33 = vmul.f32 -1.442695, %v1190_v30 }
 0xef8   :  { %2408 = vpow2.f32 %v1828_v33  ;;  %v1079_v34 = vpop.f32.mrb[10].mxu1 }
 0xef9   :  { %v1080_v36 = vadd.f32 %v2603_v41, %v1079_v34  ;;  %v2113_v37 = vpop.f32.mrb[11].mxu1 }
 0xefb   :  { %v1823_v38 = vmul.f32 -1.442695, %v1080_v36 }
 0xefd   :  { %2410 = vpow2.f32 %v1823_v38 }
 0xf02   :  { %v2409_v39 = vpop.eup %2408 }
 0xf03   :  { %v1194_v40 = vadd.f32 1.0, %v2409_v39 }
 0xf05   :  { %2412 = vrcp.f32 %v1194_v40 }
 0xf07   :  { %v2411_v43 = vpop.eup %2410 }
 0xf08   :  { %v1086_v44 = vadd.f32 1.0, %v2411_v43 }
 0xf0a   :  { %2414 = vrcp.f32 %v1086_v44 }
 0xf0f   :  { %v2413_v45 = vpop.eup %2412 }
 0xf10   :  { %v1197_v46 = vmul.f32 2.0, %v2413_v45  ;;  %v1199_v55 = vmul.f32 %v2413_v45, %v2736_v12 }
 0xf12   :  { %v1829_v47 = vadd.f32 -1.0, %v1197_v46 }
 0xf14   :  { %v2415_v48 = vpop.eup %2414  ;;  %1201 = vrot.lane.b32.xlu1 %v1829_v47, %s2457_s30 }
 0xf15   :  { %v1089_v49 = vmul.f32 2.0, %v2415_v48  ;;  %v1091_v59 = vmul.f32 %v2415_v48, %v2740_v16 }
 0xf17   :  { %v1824_v50 = vadd.f32 -1.0, %v1089_v49 }
 0xf19   :  { %1093 = vrot.lane.b32.xlu0 %v1824_v50, %s2457_s30 }
 0xf86   :  { %v1202_v51 = vpop.permute.xlu1 %1201 }
 0xf87   :  { %v1204_v52 = vmul.f32 %v2413_v45, %v1202_v51 }
 0xf89   :  { %1206 = vrot.lane.b32.xlu1 %v1204_v52, %s2458_s7 }
 0xf8b   :  { %v1094_v53 = vpop.permute.xlu0 %1093 }
 0xf8c   :  { %v1096_v54 = vmul.f32 %v2415_v48, %v1094_v53 }
 0xf8e   :  { %1098 = vrot.lane.b32.xlu0 %v1096_v54, %s2458_s7 }
 0xffb   :  { %v1207_v56 = vpop.permute.xlu1 %1206 }
 0xffc   :  { %v2778_v57 = vadd.f32 %v1207_v56, %v1199_v55 }
 0xffe   :  { %2416 = vtanh.f32 %v2778_v57 }
0x1000   :  { %v1099_v60 = vpop.permute.xlu0 %1098 }
0x1001   :  { %v2782_v61 = vadd.f32 %v1099_v60, %v1091_v59 }
0x1003   :  { %2418 = vtanh.f32 %v2782_v61 }
0x1008   :  { %v2417_v62 = vpop.eup %2416 }
0x1009   :  { %1212 = vrot.lane.b32.xlu1 %v2417_v62, %s2457_s30 }
0x100d   :  { %v2419_v63 = vpop.eup %2418 }
0x100e   :  { %1104 = vrot.lane.b32.xlu0 %v2419_v63, %s2457_s30 }
0x107b   :  { %v1213_v1 = vpop.permute.xlu1 %1212 }
0x107c   :  { %v1215_v2 = vmul.f32 %v2413_v45, %v1213_v1 }
0x107e   :  { %1217 = vrot.lane.b32.xlu0 %v1215_v2, %s2458_s7 }
0x1080   :  { %v1105_v3 = vpop.permute.xlu0 %1104 }
0x1081   :  { %v2788_v6 = vmul.f32 %v2415_v48, %v1105_v3 }
0x1083   :  { %1221 = vrot.lane.b32.xlu1 %v2788_v6, %s2457_s30 }
0x10f0   :  { %v1218_v8 = vpop.permute.xlu0 %1217 }
0x10f1   :  { %2153 = vmatmul.mubr.msk.f32.vlgmr.msra.gmra.mrb[12].mxu1 %vm45_vm1, %v1218_v8 }
0x10f2   :  { %2320 = vmatpush3.bf16.msra.mxu1 %v2545_v26  ;;  %2171 = vmatprep.mubr.msk.f32.mxu1 %vm2455_vm0, %v2456_v4 }
0x10f3   :  { %2321 = vmatprep.subr.bf16.mxu1 %v2454_v0 }
0x10f5   :  { %v1222_v9 = vpop.permute.xlu1 %1221 }
0x10f6   :  { %v1224_v10 = vsel %vm45_vm1, %v1218_v8, %v1222_v9  ;;  %2323 = vmatpush3.bf16.msra.mxu1 %v2551_v28 }
0x10f7   :  { %2142 = vmatmul.mubr.msk.f32.vlgmr.msra.gmra.mrb[10].mxu0 %vm150_vm2, %v1224_v10  ;;  %2324 = vmatprep.subr.bf16.mxu1 %v2454_v0 }
0x10f8   :  { %2332 = vmatpush3.bf16.msra.mxu0 %v2507_v5  ;;  %2182 = vmatprep.mubr.msk.f32.mxu0 %vm2455_vm0, %v2456_v4 }
0x10f9   :  { %2333 = vmatprep.subr.bf16.mxu0 %v2454_v0 }
0x10fa   :  { %2326 = vmatpush3.bf16.msra.mxu1 %v2561_v31 }
0x10fb   :  { %2327 = vmatprep.subr.bf16.mxu1 %v2454_v0 }
0x10fc   :  { %2335 = vmatpush3.bf16.msra.mxu0 %v2516_v7 }
0x10fd   :  { %2336 = vmatprep.subr.bf16.mxu0 %v2454_v0 }
0x10fe   :  { %2329 = vmatpush3.bf16.msra.mxu1 %v2572_v35 }
0x11c4   :  { %v1401_v5 = vpop.f32.mrb[12].mxu1 }
0x11c5   :  { %v1405_v12 = vadd.f32 %v1834_v11, %v1401_v5  ;;  %v2154_v13 = vpop.f32.mrb[13].mxu1 }
0x11c7   :  { %v1836_v14 = vmul.f32 -1.442695, %v1405_v12 }
0x11c9   :  { %2420 = vpow2.f32 %v1836_v14 }
0x11ca   :  { %v1294_v16 = vpop.f32.mrb[10].mxu0 }
0x11cb   :  { %v1295_v17 = vadd.f32 %v2603_v41, %v1294_v16  ;;  %v2143_v18 = vpop.f32.mrb[11].mxu0 }
0x11cd   :  { %v1831_v19 = vmul.f32 -1.442695, %v1295_v17 }
0x11cf   :  { %2422 = vpow2.f32 %v1831_v19 }
0x11d3   :  { %v2421_v7 = vpop.eup %2420 }
0x11d4   :  { %v1409_v20 = vadd.f32 1.0, %v2421_v7 }
0x11d6   :  { %2424 = vrcp.f32 %v1409_v20 }
0x11d9   :  { %v2423_v21 = vpop.eup %2422 }
0x11da   :  { %v1301_v23 = vadd.f32 1.0, %v2423_v21 }
0x11dc   :  { %2426 = vrcp.f32 %v1301_v23 }
0x11e0   :  { %v2425_v24 = vpop.eup %2424 }
0x11e1   :  { %v1412_v25 = vmul.f32 2.0, %v2425_v24  ;;  %v1414_v38 = vmul.f32 %v2425_v24, %v2778_v57 }
0x11e3   :  { %v1837_v27 = vadd.f32 -1.0, %v1412_v25 }
0x11e5   :  { %1416 = vrot.lane.b32.xlu1 %v1837_v27, %s2457_s30 }
0x11e6   :  { %v2427_v29 = vpop.eup %2426 }
0x11e7   :  { %v1304_v30 = vmul.f32 2.0, %v2427_v29  ;;  %v1306_v43 = vmul.f32 %v2427_v29, %v2782_v61 }
0x11e9   :  { %v1832_v32 = vadd.f32 -1.0, %v1304_v30 }
0x11eb   :  { %1308 = vrot.lane.b32.xlu0 %v1832_v32, %s2457_s30 }
0x1257   :  { %v1417_v33 = vpop.permute.xlu1 %1416 }
0x1258   :  { %v1419_v34 = vmul.f32 %v2425_v24, %v1417_v33 }
0x125a   :  { %1421 = vrot.lane.b32.xlu1 %v1419_v34, %s2458_s7 }
0x125d   :  { %v1309_v36 = vpop.permute.xlu0 %1308 }
0x125e   :  { %v1311_v37 = vmul.f32 %v2427_v29, %v1309_v36 }
0x1260   :  { %1313 = vrot.lane.b32.xlu0 %v1311_v37, %s2458_s7 }
0x12cc   :  { %v1422_v39 = vpop.permute.xlu1 %1421 }
0x12cd   :  { %v1424_v40 = vadd.f32 %v1422_v39, %v1414_v38 }
0x12cf   :  { %2428 = vtanh.f32 %v1424_v40 }
0x12d2   :  { %v1314_v44 = vpop.permute.xlu0 %1313 }
0x12d3   :  { %v1316_v45 = vadd.f32 %v1314_v44, %v1306_v43  ;;  %v249_v44 = vld [vmem:[%s2903_s1] sm:$0xff] }
0x12d5   :  { %2430 = vtanh.f32 %v1316_v45 }
0x12d9   :  { %v2429_v46 = vpop.eup %2428 }
0x12da   :  { %1427 = vrot.lane.b32.xlu1 %v2429_v46, %s2457_s30  ;;  %v1841_v46 = vld [vmem:[%s2903_s1 + $0x30] sm:$0xff] }
0x12df   :  { %v2431_v47 = vpop.eup %2430 }
0x12e0   :  { %1319 = vrot.lane.b32.xlu0 %v2431_v47, %s2457_s30 }
0x134c   :  { %v1428_v48 = vpop.permute.xlu1 %1427 }
0x134d   :  { %v1430_v49 = vmul.f32 %v2425_v24, %v1428_v48 }
0x134f   :  { %1432 = vrot.lane.b32.xlu0 %v1430_v49, %s2458_s7  ;;  %v1801_v49 = vld [vmem:[%s2903_s1 + $0x8] sm:$0xff] }
0x1352   :  { %v1320_v50 = vpop.permute.xlu0 %1319 }
0x1353   :  { %v2823_v51 = vmul.f32 %v2427_v29, %v1320_v50  ;;  %v1849_v50 = vld [vmem:[%s2903_s1 + $0x38] sm:$0xff] }
0x1355   :  { %1436 = vrot.lane.b32.xlu1 %v2823_v51, %s2457_s30 }
0x13c1   :  { %v1433_v52 = vpop.permute.xlu0 %1432 }
0x13c2   :  { %2183 = vmatmul.mubr.msk.f32.vlgmr.msra.gmra.mrb[12].mxu0 %vm45_vm1, %v1433_v52 }
0x13c3   :  { %2338 = vmatpush3.bf16.msra.mxu0 %v2545_v26  ;;  %2201 = vmatprep.mubr.msk.f32.mxu0 %vm2455_vm0, %v2456_v4  ;;  %v1842_v4 = vld [vmem:[%s2900_s0 + $0x38] sm:$0xff] }
0x13c4   :  { %2339 = vmatprep.subr.bf16.mxu0 %v2454_v0 }
0x13c7   :  { %v1437_v53 = vpop.permute.xlu1 %1436  ;;  %2341 = vmatpush3.bf16.msra.mxu0 %v2551_v28 }
0x13c8   :  { %v1439_v54 = vsel %vm45_vm1, %v1433_v52, %v1437_v53  ;;  %2342 = vmatprep.subr.bf16.mxu0 %v2454_v0  ;;  %v1817_v52 = vld [vmem:[%s2903_s1 + $0x18] sm:$0xff]  ;;  %v1833_v53 = vld [vmem:[%s2903_s1 + $0x28] sm:$0xff] }
0x13c9   :  { %2172 = vmatmul.mubr.msk.f32.vlgmr.msra.gmra.mrb[14].mxu1 %vm150_vm2, %v1439_v54 }
0x13cb   :  { %2344 = vmatpush3.bf16.msra.mxu0 %v2561_v31 }
0x13cc   :  { %2345 = vmatprep.subr.bf16.mxu0 %v2454_v0 }
0x13cf   :  { %2347 = vmatpush3.bf16.msra.mxu0 %v2572_v35 }
0x1495   :  { %v1616_v26 = vpop.f32.mrb[12].mxu0 }
0x1496   :  { %v1620_v55 = vadd.f32 %v1842_v4, %v1616_v26  ;;  %v2184_v56 = vpop.f32.mrb[13].mxu0 }
0x1498   :  { %v1844_v28 = vmul.f32 -1.442695, %v1620_v55 }
0x149a   :  { %2432 = vpow2.f32 %v1844_v28 }
0x149c   :  { %v1509_v57 = vpop.f32.mrb[14].mxu1 }
0x149d   :  { %v1510_v59 = vadd.f32 %v2603_v41, %v1509_v57  ;;  %v2173_v60 = vpop.f32.mrb[15].mxu1 }
0x149f   :  { %v1839_v61 = vmul.f32 -1.442695, %v1510_v59 }
0x14a1   :  { %2434 = vpow2.f32 %v1839_v61 }
0x14a4   :  { %v2433_v31 = vpop.eup %2432 }
0x14a5   :  { %v1624_v62 = vadd.f32 1.0, %v2433_v31 }
0x14a7   :  { %2436 = vrcp.f32 %v1624_v62 }
0x14ab   :  { %v2435_v0 = vpop.eup %2434 }
0x14ac   :  { %v1516_v35 = vadd.f32 1.0, %v2435_v0 }
0x14ae   :  { %2438 = vrcp.f32 %v1516_v35 }
0x14b1   :  { %v2437_v63 = vpop.eup %2436 }
0x14b2   :  { %v1627_v1 = vmul.f32 2.0, %v2437_v63  ;;  %v1629_v13 = vmul.f32 %v2437_v63, %v1424_v40 }
0x14b4   :  { %v1845_v2 = vadd.f32 -1.0, %v1627_v1 }
0x14b6   :  { %1631 = vrot.lane.b32.xlu1 %v1845_v2, %s2457_s30 }
0x14b8   :  { %v2439_v3 = vpop.eup %2438 }
0x14b9   :  { %v1519_v8 = vmul.f32 2.0, %v2439_v3  ;;  %v1521_v17 = vmul.f32 %v2439_v3, %v1316_v45  ;;  %v1825_v45 = vld [vmem:[%s2903_s1 + $0x20] sm:$0xff] }
0x14bb   :  { %v1840_v9 = vadd.f32 -1.0, %v1519_v8 }
0x14bd   :  { %1523 = vrot.lane.b32.xlu0 %v1840_v9, %s2457_s30 }
0x1528   :  { %v1632_v10 = vpop.permute.xlu1 %1631 }
0x1529   :  { %v1634_v11 = vmul.f32 %v2437_v63, %v1632_v10 }
0x152b   :  { %1636 = vrot.lane.b32.xlu1 %v1634_v11, %s2458_s7 }
0x152f   :  { %v1524_v5 = vpop.permute.xlu0 %1523 }
0x1530   :  { %v1526_v12 = vmul.f32 %v2439_v3, %v1524_v5 }
0x1532   :  { %1528 = vrot.lane.b32.xlu0 %v1526_v12, %s2458_s7 }
0x159d   :  { %v1637_v14 = vpop.permute.xlu1 %1636 }
0x159e   :  { %v1639_v16 = vadd.f32 %v1637_v14, %v1629_v13 }
0x15a0   :  { %2440 = vtanh.f32 %v1639_v16 }
0x15a4   :  { %v1529_v18 = vpop.permute.xlu0 %1528 }
0x15a5   :  { %v1531_v19 = vadd.f32 %v1529_v18, %v1521_v17 }
0x15a7   :  { %2442 = vtanh.f32 %v1531_v19 }
0x15aa   :  { %v2441_v7 = vpop.eup %2440 }
0x15ab   :  { %1642 = vrot.lane.b32.xlu1 %v2441_v7, %s2457_s30 }
0x15b1   :  { %v2443_v20 = vpop.eup %2442 }
0x15b2   :  { %1534 = vrot.lane.b32.xlu0 %v2443_v20, %s2457_s30 }
0x161d   :  { %v1643_v21 = vpop.permute.xlu1 %1642 }
0x161e   :  { %v1645_v23 = vmul.f32 %v2437_v63, %v1643_v21 }
0x1620   :  { %1647 = vrot.lane.b32.xlu0 %v1645_v23, %s2458_s7 }
0x1624   :  { %v1535_v24 = vpop.permute.xlu0 %1534 }
0x1625   :  { %v2850_v25 = vmul.f32 %v2439_v3, %v1535_v24 }
0x1627   :  { %1651 = vrot.lane.b32.xlu1 %v2850_v25, %s2457_s30 }
0x1692   :  { %v1648_v27 = vpop.permute.xlu0 %1647 }
0x1699   :  { %v1652_v29 = vpop.permute.xlu1 %1651 }
0x169a   :  { %v1654_v30 = vsel %vm45_vm1, %v1648_v27, %v1652_v29 }
0x169b   :  { %2202 = vmatmul.mubr.msk.f32.vlgmr.msra.gmra.mrb[14].mxu0 %vm150_vm2, %v1654_v30 }
0x176e   :  { %v1724_v32 = vpop.f32.mrb[14].mxu0 }
0x176f   :  { %v1725_v33 = vadd.f32 %v2603_v41, %v1724_v32  ;;  %v2203_v34 = vpop.f32.mrb[15].mxu0  ;;  %v1809_v41 = vld [vmem:[%s2903_s1 + $0x10] sm:$0xff] }
0x1771   :  { %v1847_v36 = vmul.f32 -1.442695, %v1725_v33 }
0x1773   :  { %2444 = vpow2.f32 %v1847_v36 }
0x177d   :  { %v2445_v37 = vpop.eup %2444 }
0x177e   :  { %v1731_v38 = vadd.f32 1.0, %v2445_v37 }
0x1780   :  { %2446 = vrcp.f32 %v1731_v38 }
0x178a   :  { %v2447_v39 = vpop.eup %2446 }
0x178b   :  { %v1734_v40 = vmul.f32 2.0, %v2447_v39  ;;  %v1736_v54 = vmul.f32 %v2447_v39, %v1531_v19 }
0x178d   :  { %v1848_v43 = vadd.f32 -1.0, %v1734_v40 }
0x178f   :  { %1738 = vrot.lane.b32.xlu0 %v1848_v43, %s2457_s30 }
0x1793   :  { %251 = vrot.lane.b32.xlu0 %v249_v44, %s2459_s16 }
0x1797   :  { %681 = vrot.lane.b32.xlu0 %v1809_v41, %s2459_s16 }
0x179b   :  { %1111 = vrot.lane.b32.xlu0 %v1825_v45, %s2459_s16 }
0x179f   :  { %1541 = vrot.lane.b32.xlu0 %v1841_v46, %s2459_s16 }
0x17a3   :  { %1756 = vrot.lane.b32.xlu0 %v1849_v50, %s2459_s16 }
0x1801   :  { %v1739_v47 = vpop.permute.xlu0 %1738 }
0x1802   :  { %v1741_v48 = vmul.f32 %v2447_v39, %v1739_v47 }
0x1804   :  { %1743 = vrot.lane.b32.xlu1 %v1741_v48, %s2458_s7 }
0x1805   :  { %v252_v56 = vpop.permute.xlu0 %251 }
0x1806   :  { %v254_v59 = vmul.f32 %v252_v56, %v2619_v15  ;;  %v11_v15 = vstv %s2904_s5 }
0x1807   :  { %12 = vst [vmem:[#allocation2] sm:$0x1] %v11_v15 }
0x1808   :  { %466 = vrot.lane.b32.xlu1 %v1801_v49, %s2459_s16 }
0x1809   :  { %v682_v60 = vpop.permute.xlu0 %681 }
0x180a   :  { %v684_v62 = vmul.f32 %v682_v60, %v2704_v42 }
0x180c   :  { %896 = vrot.lane.b32.xlu1 %v1817_v52, %s2459_s16 }
0x180d   :  { %v1112_v63 = vpop.permute.xlu0 %1111 }
0x180e   :  { %v1114_v3 = vmul.f32 %v1112_v63, %v2788_v6  ;;  %v1850_v16 = vld [vmem:[#allocation2] ss:$0 sm:$0xff] }
0x1810   :  { %1326 = vrot.lane.b32.xlu1 %v1833_v53, %s2459_s16 }
0x1811   :  { %v1542_v10 = vpop.permute.xlu0 %1541 }
0x1812   :  { %v1544_v5 = vmul.f32 %v1542_v10, %v2850_v25 }
0x1815   :  { %v1757_v42 = vpop.permute.xlu0 %1756 }
0x1876   :  { %v1744_v4 = vpop.permute.xlu1 %1743 }
0x1877   :  { %v1746_v26 = vadd.f32 %v1744_v4, %v1736_v54 }
0x1879   :  { %2448 = vtanh.f32 %v1746_v26 }
0x187a   :  { %v467_v28 = vpop.permute.xlu1 %466 }
0x187b   :  { %v469_v57 = vmul.f32 %v467_v28, %v2661_v58 }
0x187d   :  { %v470_v61 = vadd.f32 %v469_v57, %v254_v59 }
0x187e   :  { %v897_v31 = vpop.permute.xlu1 %896 }
0x187f   :  { %v685_v0 = vadd.f32 %v684_v62, %v470_v61  ;;  %v899_v35 = vmul.f32 %v897_v31, %v2746_v22 }
0x1881   :  { %v900_v1 = vadd.f32 %v899_v35, %v685_v0 }
0x1882   :  { %v1327_v2 = vpop.permute.xlu1 %1326 }
0x1883   :  { %v2449_v55 = vpop.eup %2448  ;;  %v1115_v8 = vadd.f32 %v1114_v3, %v900_v1  ;;  %v1329_v9 = vmul.f32 %v1327_v2, %v2823_v51 }
0x1884   :  { %1749 = vrot.lane.b32.xlu1 %v2449_v55, %s2457_s30 }
0x1885   :  { %v1330_v58 = vadd.f32 %v1329_v9, %v1115_v8 }
0x1887   :  { %v1545_v12 = vadd.f32 %v1544_v5, %v1330_v58 }
0x18f6   :  { %v1750_v11 = vpop.permute.xlu1 %1749 }
0x18f7   :  { %v1752_v22 = vmul.f32 %v2447_v39, %v1750_v11 }
0x18f9   :  { %v1759_v13 = vmul.f32 %v1757_v42, %v1752_v22 }
0x18fb   :  { %v1760_v14 = vadd.f32 %v1759_v13, %v1545_v12 }
0x18fd   :  { %1762 = vrot.lane.b32.xlu1 %v1760_v14, %s2458_s7 }
0x196f   :  { %v1763_v6 = vpop.permute.xlu1 %1762 }
0x1970   :  { %v1765_v51 = vsel %vm45_vm1, %v1763_v6, 0.0 }
0x1971   :  { %1766 = vadd.xlane.f32.xlu0 %v1765_v51 }
0x19fe   :  { %v1767_v17 = vpop.xlane.xlu0 %1766 }
0x19ff   :  { %v1775_v18 = vadd.f32 %v1850_v16, %v1767_v17 }
0x1a01   :  { %v1851_v19 = vmul.f32 -1.442695, %v1775_v18 }
0x1a03   :  { %2450 = vpow2.f32 %v1851_v19 }
0x1a0d   :  { %v2451_v7 = vpop.eup %2450 }
0x1a0e   :  { %v1779_v20 = vadd.f32 1.0, %v2451_v7 }
0x1a10   :  { %2452 = vrcp.f32 %v1779_v20 }
0x1a1a   :  { %v2453_v21 = vpop.eup %2452 }
0x1a1b   :  { %1783 = vst.msk [vmem:[%s2905_s6] sm:$0xff] %vm1782_vm3, %v2453_v21 }

</bundles_post_ra>
